<compile_context>
chip_gen: v7x
topology: tpu7x:2x2x1
jax: 0.10.0
libtpu: 0.0.40
codegen_flags: <defaults>
</compile_context>

<pallas_src>
import jax
import jax.numpy as jnp
from jax.experimental import pallas as pl
from jax.experimental.pallas import tpu as pltpu

NUM_CLASSES = 40          # DATASET_NUM_CLASS['modelnet40']
OUT_PAD = 128             # lane-dense padded logits width
H1, H2, EMB = 64, 128, 256
FC1, FC2 = 256, 128
C_IN = 3                  # xyz
C_IN_PAD = 8              # xyz zero-padded to 8 sublanes


# ----------------------------------------------------------------------------
# kernel
# ----------------------------------------------------------------------------
def make_kernel(*, bt, nc, n_chunks, n_real, compute_bf16):
    cd = jnp.bfloat16 if compute_bf16 else jnp.float32   # elementwise dtype
    need_mask = (n_chunks * nc != n_real)                 # padded points?
    m = bt * nc

    def kernel(pc_ref,
               w1_ref, b1_ref, w2_ref, b2_ref, w3_ref, b3_ref,
               fw1a_ref, fw1b_ref, fb1_ref, fw2_ref, fb2_ref, fw3_ref, fb3_ref,
               out_ref, max_ref, sum_ref):
        j = pl.program_id(1)                               # point-chunk index

        @pl.when(j == 0)
        def _():
            # post-ReLU features are >= 0, so 0 is a valid identity for max.
            max_ref[...] = jnp.zeros_like(max_ref)
            sum_ref[...] = jnp.zeros_like(sum_ref)

        def dense(x, w_ref, b_ref):
            acc = jnp.dot(x.astype(jnp.bfloat16), w_ref[...],
                          preferred_element_type=jnp.float32)
            return jnp.maximum(acc.astype(cd) + b_ref[...].astype(cd), 0.0)

        # channel-major block (bt, 8, nc) -> row-major points (bt*nc, 8)
        x = jnp.swapaxes(pc_ref[...], 1, 2).reshape(m, C_IN_PAD)
        h = dense(x, w1_ref, b1_ref)        # (m, 64)  layer-1 on the MXU
        h = dense(h, w2_ref, b2_ref)        # (m, 128)
        h = dense(h, w3_ref, b3_ref)        # (m, 256)
        h3 = h.reshape(bt, nc, EMB)

        if need_mask:
            pt = jax.lax.broadcasted_iota(jnp.int32, (1, nc, 1), 1) + j * nc
            h3 = jnp.where(pt < n_real, h3, 0.0)   # zero padded points

        # online max / sum pooling over the point axis (f32 accumulators)
        max_ref[...] = jnp.maximum(max_ref[...],
                                   jnp.max(h3, axis=1).astype(jnp.float32))
        sum_ref[...] = sum_ref[...] + jnp.sum(h3.astype(jnp.float32), axis=1)

        @pl.when(j == n_chunks - 1)
        def _():
            f_max = max_ref[...]          # (bt, EMB)
            f_sum = sum_ref[...]          # (bt, EMB); 1/N folded into fw1b
            g = (jnp.dot(f_max.astype(jnp.bfloat16), fw1a_ref[...],
                         preferred_element_type=jnp.float32)
                 + jnp.dot(f_sum.astype(jnp.bfloat16), fw1b_ref[...],
                           preferred_element_type=jnp.float32))
            g = jnp.maximum(g + fb1_ref[...], 0.0)          # (bt, FC1)
            # TODO(synk): nn.Dropout is identity in eval mode; omitted.
            g = jnp.maximum(jnp.dot(g.astype(jnp.bfloat16), fw2_ref[...],
                                    preferred_element_type=jnp.float32)
                            + fb2_ref[...], 0.0)            # (bt, FC2)
            out_ref[...] = (jnp.dot(g.astype(jnp.bfloat16), fw3_ref[...],
                                    preferred_element_type=jnp.float32)
                            + fb3_ref[...])                 # (bt, OUT_PAD)

    return kernel


# ----------------------------------------------------------------------------
# params
# ----------------------------------------------------------------------------
def init_params(key):
    # TODO(synk): if pretrained weights are ever loaded, BatchNorm scale /
    # shift / running stats must actually be folded into these weights.
    def dense_p(k, fan_in, fan_out):
        kw, kb = jax.random.split(k)
        w = (jax.random.normal(kw, (fan_in, fan_out), jnp.float32)
             / jnp.sqrt(jnp.float32(fan_in)))
        b = jax.random.normal(kb, (1, fan_out), jnp.float32) * 0.01
        return w, b

    keys = jax.random.split(key, 7)
    w1, b1 = dense_p(keys[0], C_IN_PAD, H1)
    w1 = w1.at[C_IN:].set(0.0)                 # padded xyz channels are zero
    w2, b2 = dense_p(keys[1], H1, H2)
    w3, b3 = dense_p(keys[2], H2, EMB)
    fw1a, _ = dense_p(keys[3], EMB, FC1)       # acts on max-pooled features
    fw1b, fb1 = dense_p(keys[4], EMB, FC1)     # acts on avg-pooled features
    fw2, fb2 = dense_p(keys[5], FC1, FC2)
    fw3, fb3 = dense_p(keys[6], FC2, OUT_PAD)
    fw3 = fw3.at[:, NUM_CLASSES:].set(0.0)     # padded logit lanes are zero
    fb3 = fb3.at[:, NUM_CLASSES:].set(0.0)
    bf = jnp.bfloat16
    return (w1.astype(bf), b1, w2.astype(bf), b2, w3.astype(bf), b3,
            fw1a.astype(bf), fw1b.astype(bf), fb1,
            fw2.astype(bf), fb2, fw3.astype(bf), fb3)


# ----------------------------------------------------------------------------
# wrapper
# ----------------------------------------------------------------------------
def _tpu_config():
    kind = ""
    try:
        kind = jax.devices()[0].device_kind.lower()
    except Exception:
        pass
    is_v7 = ("v7" in kind) or ("tpu7" in kind) or ("7x" in kind)
    num_tc = 2 if is_v7 else 1                 # v7x: 2 TensorCores per chip
    has_bf16_vpu = is_v7 or ("v6" in kind)     # v5e/v5p/v4: f32 VPU path
    vmem_limit = (48 if is_v7 else 64) * 1024 * 1024
    return num_tc, has_bf16_vpu, vmem_limit


def _choose_bt(B, num_tc):
    """Samples per grid step: maximize on single-TC chips, even split on v7x."""
    BT_MAX = 16
    bt = min(BT_MAX, max(1, -(-B // num_tc)))
    if bt < B:                                  # >1 batch tile -> 8-row align
        bt = min(BT_MAX, ((bt + 7) // 8) * 8)
    return bt


def curvenet_forward(pc, params, *, num_tc=1, compute_bf16=False,
                     vmem_limit_bytes=64 * 1024 * 1024, block_batch=None):
    """pc: (B, N, 3) float32 point cloud -> logits (B, NUM_CLASSES)."""
    B, N, c = pc.shape
    assert c == C_IN
    (w1, b1, w2, b2, w3, b3, fw1a, fw1b, fb1, fw2, fb2, fw3, fb3) = params

    # mean pooling == sum pooling with 1/N folded into the avg-branch weight.
    fw1b_eff = (fw1b.astype(jnp.float32) * (1.0 / N)).astype(fw1b.dtype)
    params_eff = (w1, b1, w2, b2, w3, b3,
                  fw1a, fw1b_eff, fb1, fw2, fb2, fw3, fb3)

    nc = 256 if (N % 256 == 0) else 128          # point-chunk size (lane dim)
    n_chunks = pl.cdiv(N, nc)
    n_pad = n_chunks * nc

    bt = block_batch if block_batch is not None else _choose_bt(B, num_tc)
    num_tiles = pl.cdiv(B, bt)
    b_pad = num_tiles * bt

    # channel-major, zero-padded input: (b_pad, 8, n_pad), lane dim = points.
    pc_cm = jnp.transpose(pc.astype(jnp.float32), (0, 2, 1))
    pc_cm = jnp.pad(pc_cm, ((0, b_pad - B), (0, C_IN_PAD - C_IN),
                            (0, n_pad - N)))

    kernel = make_kernel(bt=bt, nc=nc, n_chunks=n_chunks, n_real=N,
                         compute_bf16=compute_bf16)

    in_specs = [pl.BlockSpec((bt, C_IN_PAD, nc), lambda b, j: (b, 0, j))]
    in_specs += [pl.BlockSpec(p.shape, lambda b, j, nd=p.ndim: (0,) * nd)
                 for p in params_eff]

    flops = (2 * b_pad * n_pad * (C_IN_PAD * H1 + H1 * H2 + H2 * EMB)
             + 2 * b_pad * (2 * EMB * FC1 + FC1 * FC2 + FC2 * OUT_PAD))
    bytes_accessed = (int(pc_cm.size) * 4
                      + sum(int(p.size) * int(p.dtype.itemsize)
                            for p in params_eff)
                      + b_pad * OUT_PAD * 4)

    out = pl.pallas_call(
        kernel,
        out_shape=jax.ShapeDtypeStruct((b_pad, OUT_PAD), jnp.float32),
        grid=(num_tiles, n_chunks),
        in_specs=in_specs,
        out_specs=pl.BlockSpec((bt, OUT_PAD), lambda b, j: (b, 0)),
        scratch_shapes=[pltpu.VMEM((bt, EMB), jnp.float32),   # running max
                        pltpu.VMEM((bt, EMB), jnp.float32)],  # running sum
        compiler_params=pltpu.CompilerParams(
            dimension_semantics=("parallel", "arbitrary"),
            vmem_limit_bytes=int(vmem_limit_bytes)),
        cost_estimate=pl.CostEstimate(flops=int(flops), transcendentals=0,
                                      bytes_accessed=int(bytes_accessed)),
    )(pc_cm, *params_eff)
    return out[:B, :NUM_CLASSES]


class CurveNetPallas:
    """Mirrors the PyTorch CurveNet wrapper (task='cls')."""

    def __init__(self, task='cls', dataset='modelnet40'):
        assert task == 'cls'
        self.task = task
        self.dataset = dataset
        self.params = init_params(jax.random.PRNGKey(42))
        num_tc, compute_bf16, vmem_limit = _tpu_config()
        self._forward = jax.jit(
            lambda pc, params: curvenet_forward(
                pc, params, num_tc=num_tc, compute_bf16=compute_bf16,
                vmem_limit_bytes=vmem_limit))

    def __call__(self, **data):
        pc = data['pc']
        cls = data.get('cls')
        assert cls is None
        logit = self._forward(pc, self.params)
        return {'logit': logit}


if __name__ == "__main__":
    key = jax.random.PRNGKey(0)
    B, N = 2, 128
    pc = jax.random.normal(key, (B, N, C_IN), dtype=jnp.float32)

    model = CurveNetPallas(task='cls', dataset='modelnet40')
    out = model(pc=pc, normal=None, cls=None)
    logit = jax.block_until_ready(out['logit'])

    assert logit.shape == (B, NUM_CLASSES)
    assert logit.dtype == jnp.float32
    assert bool(jnp.all(jnp.isfinite(logit)))
    print("KERNEL_OK")
</pallas_src>

<mosaic_0001>
module attributes {stable_mosaic.version = 11 : i64} {
  func.func @kernel(%arg0: i32, %arg1: i32, %arg2: memref<2x8x128xf32, #tpu.memory_space<vmem>>, %arg3: memref<8x64xbf16, #tpu.memory_space<vmem>>, %arg4: memref<1x64xf32, #tpu.memory_space<vmem>>, %arg5: memref<64x128xbf16, #tpu.memory_space<vmem>>, %arg6: memref<1x128xf32, #tpu.memory_space<vmem>>, %arg7: memref<128x256xbf16, #tpu.memory_space<vmem>>, %arg8: memref<1x256xf32, #tpu.memory_space<vmem>>, %arg9: memref<256x256xbf16, #tpu.memory_space<vmem>>, %arg10: memref<256x256xbf16, #tpu.memory_space<vmem>>, %arg11: memref<1x256xf32, #tpu.memory_space<vmem>>, %arg12: memref<256x128xbf16, #tpu.memory_space<vmem>>, %arg13: memref<1x128xf32, #tpu.memory_space<vmem>>, %arg14: memref<128x128xbf16, #tpu.memory_space<vmem>>, %arg15: memref<1x128xf32, #tpu.memory_space<vmem>>, %arg16: memref<2x128xf32, #tpu.memory_space<vmem>>, %arg17: memref<2x256xf32, #tpu.memory_space<vmem>>, %arg18: memref<2x256xf32, #tpu.memory_space<vmem>>) attributes {dimension_semantics = [#tpu.dimension_semantics<parallel>, #tpu.dimension_semantics<arbitrary>], iteration_bounds = array<i64: 1, 1>, scalar_prefetch = 0 : i64, scratch_operands = 2 : i64, tpu.core_type = #tpu.core_type<tc>, window_params = [{transform_indices = @transform_0, window_bounds = array<i64: 2, 8, 128>}, {pipeline_mode = #tpu.pipeline_mode<synchronous>, transform_indices = @transform_1, window_bounds = array<i64: 8, 64>}, {pipeline_mode = #tpu.pipeline_mode<synchronous>, transform_indices = @transform_2, window_bounds = array<i64: 1, 64>}, {pipeline_mode = #tpu.pipeline_mode<synchronous>, transform_indices = @transform_3, window_bounds = array<i64: 64, 128>}, {pipeline_mode = #tpu.pipeline_mode<synchronous>, transform_indices = @transform_4, window_bounds = array<i64: 1, 128>}, {pipeline_mode = #tpu.pipeline_mode<synchronous>, transform_indices = @transform_5, window_bounds = array<i64: 128, 256>}, {pipeline_mode = #tpu.pipeline_mode<synchronous>, transform_indices = @transform_6, window_bounds = array<i64: 1, 256>}, {pipeline_mode = #tpu.pipeline_mode<synchronous>, transform_indices = @transform_7, window_bounds = array<i64: 256, 256>}, {pipeline_mode = #tpu.pipeline_mode<synchronous>, transform_indices = @transform_8, window_bounds = array<i64: 256, 256>}, {pipeline_mode = #tpu.pipeline_mode<synchronous>, transform_indices = @transform_9, window_bounds = array<i64: 1, 256>}, {pipeline_mode = #tpu.pipeline_mode<synchronous>, transform_indices = @transform_10, window_bounds = array<i64: 256, 128>}, {pipeline_mode = #tpu.pipeline_mode<synchronous>, transform_indices = @transform_11, window_bounds = array<i64: 1, 128>}, {pipeline_mode = #tpu.pipeline_mode<synchronous>, transform_indices = @transform_12, window_bounds = array<i64: 128, 128>}, {pipeline_mode = #tpu.pipeline_mode<synchronous>, transform_indices = @transform_13, window_bounds = array<i64: 1, 128>}, {transform_indices = @transform_14, window_bounds = array<i64: 2, 128>}]} {
    %c0_i32 = arith.constant 0 : i32
    %0 = arith.cmpi eq, %arg1, %c0_i32 : i32
    %1 = arith.extui %0 : i1 to i32
    %c0_i32_0 = arith.constant 0 : i32
    %2 = arith.cmpi ne, %1, %c0_i32_0 : i32
    scf.if %2 {
      %cst_32 = arith.constant 0.000000e+00 : f32
      %42 = vector.broadcast %cst_32 : f32 to vector<2x256xf32>
      %c0_33 = arith.constant 0 : index
      %c0_34 = arith.constant 0 : index
      %43 = vector.load %arg17[%c0_33, %c0_34] : memref<2x256xf32, #tpu.memory_space<vmem>>, vector<2x256xf32>
      tpu.vector_store %arg17[%c0_33, %c0_34], %42 {strides = array<i32>} : memref<2x256xf32, #tpu.memory_space<vmem>>, vector<2x256xf32>,
      %cst_35 = arith.constant 0.000000e+00 : f32
      %44 = vector.broadcast %cst_35 : f32 to vector<2x256xf32>
      %c0_36 = arith.constant 0 : index
      %c0_37 = arith.constant 0 : index
      %45 = vector.load %arg18[%c0_36, %c0_37] : memref<2x256xf32, #tpu.memory_space<vmem>>, vector<2x256xf32>
      tpu.vector_store %arg18[%c0_36, %c0_37], %44 {strides = array<i32>} : memref<2x256xf32, #tpu.memory_space<vmem>>, vector<2x256xf32>,
    } else {
    }
    %c0 = arith.constant 0 : index
    %c0_1 = arith.constant 0 : index
    %c0_2 = arith.constant 0 : index
    %3 = vector.load %arg2[%c0, %c0_1, %c0_2] : memref<2x8x128xf32, #tpu.memory_space<vmem>>, vector<2x8x128xf32>
    %4 = tpu.transpose %3, [0, 2, 1] : vector<2x8x128xf32> -> vector<2x128x8xf32>
    %5 = vector.shape_cast %4 : vector<2x128x8xf32> to vector<256x8xf32>
    %6 = arith.truncf %5 : vector<256x8xf32> to vector<256x8xbf16>
    %c0_3 = arith.constant 0 : index
    %c0_4 = arith.constant 0 : index
    %7 = vector.load %arg3[%c0_3, %c0_4] : memref<8x64xbf16, #tpu.memory_space<vmem>>, vector<8x64xbf16>
    %cst = arith.constant dense<0.000000e+00> : vector<256x64xf32>
    %8 = tpu.matmul %6, %7, %cst {dimension_numbers = #tpu.dot_dimension_numbers<[1], [0], [0], [1], [0, 0, 1, 1], [], []>} : vector<256x8xbf16>, vector<8x64xbf16>, vector<256x64xf32> -> vector<256x64xf32>
    %c0_5 = arith.constant 0 : index
    %c0_6 = arith.constant 0 : index
    %9 = vector.load %arg4[%c0_5, %c0_6] : memref<1x64xf32, #tpu.memory_space<vmem>>, vector<1x64xf32>
    %10 = vector.broadcast %9 : vector<1x64xf32> to vector<256x64xf32>
    %11 = arith.addf %8, %10 : vector<256x64xf32>
    %cst_7 = arith.constant 0.000000e+00 : f32
    %12 = vector.broadcast %cst_7 : f32 to vector<256x64xf32>
    %13 = arith.maximumf %11, %12 : vector<256x64xf32>
    %14 = arith.truncf %13 : vector<256x64xf32> to vector<256x64xbf16>
    %c0_8 = arith.constant 0 : index
    %c0_9 = arith.constant 0 : index
    %15 = vector.load %arg5[%c0_8, %c0_9] : memref<64x128xbf16, #tpu.memory_space<vmem>>, vector<64x128xbf16>
    %cst_10 = arith.constant dense<0.000000e+00> : vector<256x128xf32>
    %16 = tpu.matmul %14, %15, %cst_10 {dimension_numbers = #tpu.dot_dimension_numbers<[1], [0], [0], [1], [0, 0, 1, 1], [], []>} : vector<256x64xbf16>, vector<64x128xbf16>, vector<256x128xf32> -> vector<256x128xf32>
    %c0_11 = arith.constant 0 : index
    %c0_12 = arith.constant 0 : index
    %17 = vector.load %arg6[%c0_11, %c0_12] : memref<1x128xf32, #tpu.memory_space<vmem>>, vector<1x128xf32>
    %18 = vector.broadcast %17 : vector<1x128xf32> to vector<256x128xf32>
    %19 = arith.addf %16, %18 : vector<256x128xf32>
    %cst_13 = arith.constant 0.000000e+00 : f32
    %20 = vector.broadcast %cst_13 : f32 to vector<256x128xf32>
    %21 = arith.maximumf %19, %20 : vector<256x128xf32>
    %22 = arith.truncf %21 : vector<256x128xf32> to vector<256x128xbf16>
    %c0_14 = arith.constant 0 : index
    %c0_15 = arith.constant 0 : index
    %23 = vector.load %arg7[%c0_14, %c0_15] : memref<128x256xbf16, #tpu.memory_space<vmem>>, vector<128x256xbf16>
    %cst_16 = arith.constant dense<0.000000e+00> : vector<256x256xf32>
    %24 = tpu.matmul %22, %23, %cst_16 {dimension_numbers = #tpu.dot_dimension_numbers<[1], [0], [0], [1], [0, 0, 1, 1], [], []>} : vector<256x128xbf16>, vector<128x256xbf16>, vector<256x256xf32> -> vector<256x256xf32>
    %c0_17 = arith.constant 0 : index
    %c0_18 = arith.constant 0 : index
    %25 = vector.load %arg8[%c0_17, %c0_18] : memref<1x256xf32, #tpu.memory_space<vmem>>, vector<1x256xf32>
    %26 = vector.broadcast %25 : vector<1x256xf32> to vector<256x256xf32>
    %27 = arith.addf %24, %26 : vector<256x256xf32>
    %cst_19 = arith.constant 0.000000e+00 : f32
    %28 = vector.broadcast %cst_19 : f32 to vector<256x256xf32>
    %29 = arith.maximumf %27, %28 : vector<256x256xf32>
    %30 = vector.shape_cast %29 : vector<256x256xf32> to vector<2x128x256xf32>
    %c0_20 = arith.constant 0 : index
    %c0_21 = arith.constant 0 : index
    %31 = vector.load %arg17[%c0_20, %c0_21] : memref<2x256xf32, #tpu.memory_space<vmem>>, vector<2x256xf32>
    %cst_22 = arith.constant dense<0xFF800000> : vector<2x256xf32>
    %32 = vector.multi_reduction <maximumf>, %30, %cst_22 [1] : vector<2x128x256xf32> to vector<2x256xf32>
    %33 = arith.maximumf %31, %32 : vector<2x256xf32>
    %c0_23 = arith.constant 0 : index
    %c0_24 = arith.constant 0 : index
    %34 = vector.load %arg17[%c0_23, %c0_24] : memref<2x256xf32, #tpu.memory_space<vmem>>, vector<2x256xf32>
    tpu.vector_store %arg17[%c0_23, %c0_24], %33 {strides = array<i32>} : memref<2x256xf32, #tpu.memory_space<vmem>>, vector<2x256xf32>,
    %c0_25 = arith.constant 0 : index
    %c0_26 = arith.constant 0 : index
    %35 = vector.load %arg18[%c0_25, %c0_26] : memref<2x256xf32, #tpu.memory_space<vmem>>, vector<2x256xf32>
    %cst_27 = arith.constant dense<0.000000e+00> : vector<2x256xf32>
    %36 = vector.multi_reduction <add>, %30, %cst_27 [1] : vector<2x128x256xf32> to vector<2x256xf32>
    %37 = arith.addf %35, %36 : vector<2x256xf32>
    %c0_28 = arith.constant 0 : index
    %c0_29 = arith.constant 0 : index
    %38 = vector.load %arg18[%c0_28, %c0_29] : memref<2x256xf32, #tpu.memory_space<vmem>>, vector<2x256xf32>
    tpu.vector_store %arg18[%c0_28, %c0_29], %37 {strides = array<i32>} : memref<2x256xf32, #tpu.memory_space<vmem>>, vector<2x256xf32>,
    %c0_i32_30 = arith.constant 0 : i32
    %39 = arith.cmpi eq, %arg1, %c0_i32_30 : i32
    %40 = arith.extui %39 : i1 to i32
    %c0_i32_31 = arith.constant 0 : i32
    %41 = arith.cmpi ne, %40, %c0_i32_31 : i32
    scf.if %41 {
      %c0_32 = arith.constant 0 : index
      %c0_33 = arith.constant 0 : index
      %42 = vector.load %arg17[%c0_32, %c0_33] : memref<2x256xf32, #tpu.memory_space<vmem>>, vector<2x256xf32>
      %c0_34 = arith.constant 0 : index
      %c0_35 = arith.constant 0 : index
      %43 = vector.load %arg18[%c0_34, %c0_35] : memref<2x256xf32, #tpu.memory_space<vmem>>, vector<2x256xf32>
      %44 = arith.truncf %42 : vector<2x256xf32> to vector<2x256xbf16>
      %c0_36 = arith.constant 0 : index
      %c0_37 = arith.constant 0 : index
      %45 = vector.load %arg9[%c0_36, %c0_37] : memref<256x256xbf16, #tpu.memory_space<vmem>>, vector<256x256xbf16>
      %cst_38 = arith.constant dense<0.000000e+00> : vector<2x256xf32>
      %46 = tpu.matmul %44, %45, %cst_38 {dimension_numbers = #tpu.dot_dimension_numbers<[1], [0], [0], [1], [0, 0, 1, 1], [], []>} : vector<2x256xbf16>, vector<256x256xbf16>, vector<2x256xf32> -> vector<2x256xf32>
      %47 = arith.truncf %43 : vector<2x256xf32> to vector<2x256xbf16>
      %c0_39 = arith.constant 0 : index
      %c0_40 = arith.constant 0 : index
      %48 = vector.load %arg10[%c0_39, %c0_40] : memref<256x256xbf16, #tpu.memory_space<vmem>>, vector<256x256xbf16>
      %cst_41 = arith.constant dense<0.000000e+00> : vector<2x256xf32>
      %49 = tpu.matmul %47, %48, %cst_41 {dimension_numbers = #tpu.dot_dimension_numbers<[1], [0], [0], [1], [0, 0, 1, 1], [], []>} : vector<2x256xbf16>, vector<256x256xbf16>, vector<2x256xf32> -> vector<2x256xf32>
      %50 = arith.addf %46, %49 : vector<2x256xf32>
      %c0_42 = arith.constant 0 : index
      %c0_43 = arith.constant 0 : index
      %51 = vector.load %arg11[%c0_42, %c0_43] : memref<1x256xf32, #tpu.memory_space<vmem>>, vector<1x256xf32>
      %52 = vector.broadcast %51 : vector<1x256xf32> to vector<2x256xf32>
      %53 = arith.addf %50, %52 : vector<2x256xf32>
      %cst_44 = arith.constant 0.000000e+00 : f32
      %54 = vector.broadcast %cst_44 : f32 to vector<2x256xf32>
      %55 = arith.maximumf %53, %54 : vector<2x256xf32>
      %56 = arith.truncf %55 : vector<2x256xf32> to vector<2x256xbf16>
      %c0_45 = arith.constant 0 : index
      %c0_46 = arith.constant 0 : index
      %57 = vector.load %arg12[%c0_45, %c0_46] : memref<256x128xbf16, #tpu.memory_space<vmem>>, vector<256x128xbf16>
      %cst_47 = arith.constant dense<0.000000e+00> : vector<2x128xf32>
      %58 = tpu.matmul %56, %57, %cst_47 {dimension_numbers = #tpu.dot_dimension_numbers<[1], [0], [0], [1], [0, 0, 1, 1], [], []>} : vector<2x256xbf16>, vector<256x128xbf16>, vector<2x128xf32> -> vector<2x128xf32>
      %c0_48 = arith.constant 0 : index
      %c0_49 = arith.constant 0 : index
      %59 = vector.load %arg13[%c0_48, %c0_49] : memref<1x128xf32, #tpu.memory_space<vmem>>, vector<1x128xf32>
      %60 = vector.broadcast %59 : vector<1x128xf32> to vector<2x128xf32>
      %61 = arith.addf %58, %60 : vector<2x128xf32>
      %cst_50 = arith.constant 0.000000e+00 : f32
      %62 = vector.broadcast %cst_50 : f32 to vector<2x128xf32>
      %63 = arith.maximumf %61, %62 : vector<2x128xf32>
      %64 = arith.truncf %63 : vector<2x128xf32> to vector<2x128xbf16>
      %c0_51 = arith.constant 0 : index
      %c0_52 = arith.constant 0 : index
      %65 = vector.load %arg14[%c0_51, %c0_52] : memref<128x128xbf16, #tpu.memory_space<vmem>>, vector<128x128xbf16>
      %cst_53 = arith.constant dense<0.000000e+00> : vector<2x128xf32>
      %66 = tpu.matmul %64, %65, %cst_53 {dimension_numbers = #tpu.dot_dimension_numbers<[1], [0], [0], [1], [0, 0, 1, 1], [], []>} : vector<2x128xbf16>, vector<128x128xbf16>, vector<2x128xf32> -> vector<2x128xf32>
      %c0_54 = arith.constant 0 : index
      %c0_55 = arith.constant 0 : index
      %67 = vector.load %arg15[%c0_54, %c0_55] : memref<1x128xf32, #tpu.memory_space<vmem>>, vector<1x128xf32>
      %68 = vector.broadcast %67 : vector<1x128xf32> to vector<2x128xf32>
      %69 = arith.addf %66, %68 : vector<2x128xf32>
      %c0_56 = arith.constant 0 : index
      %c0_57 = arith.constant 0 : index
      %70 = vector.load %arg16[%c0_56, %c0_57] : memref<2x128xf32, #tpu.memory_space<vmem>>, vector<2x128xf32>
      tpu.vector_store %arg16[%c0_56, %c0_57], %69 {strides = array<i32>} : memref<2x128xf32, #tpu.memory_space<vmem>>, vector<2x128xf32>,
    } else {
    }
    return
  }
  func.func @transform_0(%arg0: i32, %arg1: i32) -> (i32, i32, i32) {
    %c0_i32 = arith.constant 0 : i32
    %c0_i32_0 = arith.constant 0 : i32
    return %arg0, %c0_i32, %arg1 : i32, i32, i32
  }
  func.func @transform_1(%arg0: i32, %arg1: i32) -> (i32, i32) {
    %c0_i32 = arith.constant 0 : i32
    %c0_i32_0 = arith.constant 0 : i32
    %c0_i32_1 = arith.constant 0 : i32
    return %c0_i32, %c0_i32_0 : i32, i32
  }
  func.func @transform_2(%arg0: i32, %arg1: i32) -> (i32, i32) {
    %c0_i32 = arith.constant 0 : i32
    %c0_i32_0 = arith.constant 0 : i32
    %c0_i32_1 = arith.constant 0 : i32
    return %c0_i32, %c0_i32_0 : i32, i32
  }
  func.func @transform_3(%arg0: i32, %arg1: i32) -> (i32, i32) {
    %c0_i32 = arith.constant 0 : i32
    %c0_i32_0 = arith.constant 0 : i32
    %c0_i32_1 = arith.constant 0 : i32
    return %c0_i32, %c0_i32_0 : i32, i32
  }
  func.func @transform_4(%arg0: i32, %arg1: i32) -> (i32, i32) {
    %c0_i32 = arith.constant 0 : i32
    %c0_i32_0 = arith.constant 0 : i32
    %c0_i32_1 = arith.constant 0 : i32
    return %c0_i32, %c0_i32_0 : i32, i32
  }
  func.func @transform_5(%arg0: i32, %arg1: i32) -> (i32, i32) {
    %c0_i32 = arith.constant 0 : i32
    %c0_i32_0 = arith.constant 0 : i32
    %c0_i32_1 = arith.constant 0 : i32
    return %c0_i32, %c0_i32_0 : i32, i32
  }
  func.func @transform_6(%arg0: i32, %arg1: i32) -> (i32, i32) {
    %c0_i32 = arith.constant 0 : i32
    %c0_i32_0 = arith.constant 0 : i32
    %c0_i32_1 = arith.constant 0 : i32
    return %c0_i32, %c0_i32_0 : i32, i32
  }
  func.func @transform_7(%arg0: i32, %arg1: i32) -> (i32, i32) {
    %c0_i32 = arith.constant 0 : i32
    %c0_i32_0 = arith.constant 0 : i32
    %c0_i32_1 = arith.constant 0 : i32
    return %c0_i32, %c0_i32_0 : i32, i32
  }
  func.func @transform_8(%arg0: i32, %arg1: i32) -> (i32, i32) {
    %c0_i32 = arith.constant 0 : i32
    %c0_i32_0 = arith.constant 0 : i32
    %c0_i32_1 = arith.constant 0 : i32
    return %c0_i32, %c0_i32_0 : i32, i32
  }
  func.func @transform_9(%arg0: i32, %arg1: i32) -> (i32, i32) {
    %c0_i32 = arith.constant 0 : i32
    %c0_i32_0 = arith.constant 0 : i32
    %c0_i32_1 = arith.constant 0 : i32
    return %c0_i32, %c0_i32_0 : i32, i32
  }
  func.func @transform_10(%arg0: i32, %arg1: i32) -> (i32, i32) {
    %c0_i32 = arith.constant 0 : i32
    %c0_i32_0 = arith.constant 0 : i32
    %c0_i32_1 = arith.constant 0 : i32
    return %c0_i32, %c0_i32_0 : i32, i32
  }
  func.func @transform_11(%arg0: i32, %arg1: i32) -> (i32, i32) {
    %c0_i32 = arith.constant 0 : i32
    %c0_i32_0 = arith.constant 0 : i32
    %c0_i32_1 = arith.constant 0 : i32
    return %c0_i32, %c0_i32_0 : i32, i32
  }
  func.func @transform_12(%arg0: i32, %arg1: i32) -> (i32, i32) {
    %c0_i32 = arith.constant 0 : i32
    %c0_i32_0 = arith.constant 0 : i32
    %c0_i32_1 = arith.constant 0 : i32
    return %c0_i32, %c0_i32_0 : i32, i32
  }
  func.func @transform_13(%arg0: i32, %arg1: i32) -> (i32, i32) {
    %c0_i32 = arith.constant 0 : i32
    %c0_i32_0 = arith.constant 0 : i32
    %c0_i32_1 = arith.constant 0 : i32
    return %c0_i32, %c0_i32_0 : i32, i32
  }
  func.func @transform_14(%arg0: i32, %arg1: i32) -> (i32, i32) {
    %c0_i32 = arith.constant 0 : i32
    %c0_i32_0 = arith.constant 0 : i32
    return %arg0, %c0_i32 : i32, i32
  }
}

</mosaic_0001>

<bundles_post_ra>
// kernel: _lambda_.1
= control target key start
LH: loop header
LB: loop body
LE: loop exit
PB: predicated region body
PF: predicated region fallthrough
CT: control target
= control target key end

     0   :  { %19 = vsyncpa [#allocation5], 0  ;;  %s3690_s0 = inlined_call_operand.hbm [shape: f32[2,8,128], index: 0, kind: input, shape index: {}]   ;;  %s3691_s1 = inlined_call_operand.hbm [shape: bf16[8,64], index: 1, kind: input, shape index: {}]   ;;  %s3692_s2 = inlined_call_operand.hbm [shape: f32[1,64], index: 2, kind: input, shape index: {}]   ;;  %s3693_s3 = inlined_call_operand.hbm [shape: bf16[64,128], index: 3, kind: input, shape index: {}]   ;;  %s3694_s4 = inlined_call_operand.hbm [shape: f32[1,128], index: 4, kind: input, shape index: {}]   ;;  %s3695_s5 = inlined_call_operand.hbm [shape: bf16[128,256], index: 5, kind: input, shape index: {}]   ;;  %s3696_s6 = inlined_call_operand.hbm [shape: f32[1,256], index: 6, kind: input, shape index: {}]   ;;  %s3697_s7 = inlined_call_operand.hbm [shape: bf16[256,256], index: 7, kind: input, shape index: {}]   ;;  %s3698_s8 = inlined_call_operand.hbm [shape: bf16[256,256], index: 8, kind: input, shape index: {}]   ;;  %s3699_s9 = inlined_call_operand.hbm [shape: f32[1,256], index: 9, kind: input, shape index: {}]   ;;  %s3700_s10 = inlined_call_operand.hbm [shape: bf16[256,128], index: 10, kind: input, shape index: {}]   ;;  %s3701_s11 = inlined_call_operand.hbm [shape: f32[1,128], index: 11, kind: input, shape index: {}]   ;;  %s3702_s12 = inlined_call_operand.hbm [shape: bf16[128,128], index: 12, kind: input, shape index: {}]   ;;  %s3703_s13 = inlined_call_operand.hbm [shape: f32[1,128], index: 13, kind: input, shape index: {}]   ;;  %s3704_s14 = inlined_call_operand.hbm [shape: f32[2,128], index: 14, kind: output, shape index: {}]  }
   0x1   :  { %20 = vsyncpa [#allocation8], 0 }
   0x2   :  { %21 = vsyncpa [#allocation11], 0 }
   0x3   :  { %22 = vsyncpa [#allocation14], 0 }
   0x4   :  { %23 = vsyncpa [#allocation17], 0 }
   0x5   :  { %24 = vsyncpa [#allocation20], 0 }
   0x6   :  { %25 = vsyncpa [#allocation23], 0 }
   0x7   :  { %26 = vsyncpa [#allocation26], 0 }
   0x8   :  { %27 = vsyncpa [#allocation6], 0  ;;  %s3138_s29 = smov [#allocation7]   ;;  %s3139_s15 = smov [#allocation10]  }
   0x9   :  { %s46_s30 = sshll.u32 %s3138_s29, 4  ;;  %s65_s16 = sshll.u32 %s3139_s15, 4  ;;  %s47_s30 = int_to_ptr.vmem [resolvable:$true] %s46_s30  ;;  %s3236_s16 = int_to_ptr.vmem [resolvable:$true] %s65_s16 }
   0xa   :  { %s2790_s19 = scalar_lea.hbm %s3691_s1, 64 }
   0xb   :  { %p2791_p0 = scmp.ne.s32.totalorder %s3691_s1, %s2790_s19  ;;  %p2794_p1 = scmp.lt.u32.totalorder %s2790_s19, %s3691_s1 }
   0xd   :  { %p2796_p2 = pnand %p2794_p1, %p2791_p0 }
   0xf   :  { %2799 = shalt.err (!%p2796_p2)
}
  0x10   :  { %s2800_s24 = scalar_lea.vmem %s47_s30, 64  ;;  %p2805_p4 = scmp.lt.s32.totalorder %s47_s30, %s47_s30 }
  0x11   :  { %p2801_p3 = scmp.ne.s32.totalorder %s47_s30, %s2800_s24  ;;  %p2806_p5 = scmp.lt.s32.totalorder %s2800_s24, %s2800_s24 }
  0x13   :  { %p2807_p6 = por %p2806_p5, %p2805_p4 }
  0x15   :  { %p2808_p7 = pnand %p2807_p6, %p2801_p3 }
  0x17   :  { %2811 = shalt.err (!%p2808_p7)
}
  0x18   :  { %49 = dma.hbm_to_vmem [thread:$0]  %s3691_s1, 64, %s47_s30, [#allocation8]  }
  0x19   :  { %s2812_s29 = scalar_lea.hbm %s3693_s3, 512 }
  0x1a   :  { %p2813_p8 = scmp.ne.s32.totalorder %s3693_s3, %s2812_s29  ;;  %p2816_p9 = scmp.lt.u32.totalorder %s2812_s29, %s3693_s3 }
  0x1c   :  { %p2818_p10 = pnand %p2816_p9, %p2813_p8 }
  0x1e   :  { %2821 = shalt.err (!%p2818_p10)
}
  0x1f   :  { %s2822_s20 = scalar_lea.vmem %s3236_s16, 512  ;;  %p2827_p12 = scmp.lt.s32.totalorder %s3236_s16, %s3236_s16 }
  0x20   :  { %p2823_p11 = scmp.ne.s32.totalorder %s3236_s16, %s2822_s20  ;;  %p2828_p13 = scmp.lt.s32.totalorder %s2822_s20, %s2822_s20 }
  0x22   :  { %p2829_p0 = por %p2828_p13, %p2827_p12 }
  0x24   :  { %p2830_p1 = pnand %p2829_p0, %p2823_p11 }
  0x26   :  { %2833 = shalt.err (!%p2830_p1)
}
  0x27   :  { %s3140_s1 = smov 64   ;;  %s3141_s30 = smov 4  }
  0x28   :  { %71 = dma.hbm_to_vmem [thread:$0]  %s3693_s3, 512, %s3236_s16, [#allocation11], %s3140_s1, %s3140_s1, %s3141_s30  }
  0x29   :  { %s3142_s23 = smov [#allocation13]   ;;  %s3143_s25 = smov [#allocation16]  }
  0x2a   :  { %s87_s24 = sshll.u32 %s3142_s23, 4  ;;  %s109_s26 = sshll.u32 %s3143_s25, 4  ;;  %s88_s24 = int_to_ptr.vmem [resolvable:$true] %s87_s24  ;;  %s3270_s26 = int_to_ptr.vmem [resolvable:$true] %s109_s26 }
  0x2b   :  { %s2834_s29 = scalar_lea.hbm %s3695_s5, 2048 }
  0x2c   :  { %p2835_p2 = scmp.ne.s32.totalorder %s3695_s5, %s2834_s29  ;;  %p2838_p3 = scmp.lt.u32.totalorder %s2834_s29, %s3695_s5 }
  0x2e   :  { %p2840_p4 = pnand %p2838_p3, %p2835_p2 }
  0x30   :  { %2843 = shalt.err (!%p2840_p4)
}
  0x31   :  { %s2844_s3 = scalar_lea.vmem %s88_s24, 2048  ;;  %p2849_p6 = scmp.lt.s32.totalorder %s88_s24, %s88_s24 }
  0x32   :  { %p2845_p5 = scmp.ne.s32.totalorder %s88_s24, %s2844_s3  ;;  %p2850_p7 = scmp.lt.s32.totalorder %s2844_s3, %s2844_s3 }
  0x34   :  { %p2851_p8 = por %p2850_p7, %p2849_p6 }
  0x36   :  { %p2852_p9 = pnand %p2851_p8, %p2845_p5 }
  0x38   :  { %2855 = shalt.err (!%p2852_p9)
}
  0x39   :  { %s3144_s16 = smov 128   ;;  %s3145_s20 = smov 8  }
  0x3a   :  { %93 = dma.hbm_to_vmem [thread:$0]  %s3695_s5, 2048, %s88_s24, [#allocation14], %s3144_s16, %s3144_s16, %s3145_s20  }
  0x3b   :  { %s2856_s27 = scalar_lea.hbm %s3697_s7, 4096 }
  0x3c   :  { %p2857_p10 = scmp.ne.s32.totalorder %s3697_s7, %s2856_s27  ;;  %p2860_p11 = scmp.lt.u32.totalorder %s2856_s27, %s3697_s7 }
  0x3e   :  { %p2862_p12 = pnand %p2860_p11, %p2857_p10 }
  0x40   :  { %2865 = shalt.err (!%p2862_p12)
}
  0x41   :  { %s2866_s18 = scalar_lea.vmem %s3270_s26, 4096  ;;  %p2871_p0 = scmp.lt.s32.totalorder %s3270_s26, %s3270_s26 }
  0x42   :  { %p2867_p13 = scmp.ne.s32.totalorder %s3270_s26, %s2866_s18  ;;  %p2872_p1 = scmp.lt.s32.totalorder %s2866_s18, %s2866_s18 }
  0x44   :  { %p2873_p2 = por %p2872_p1, %p2871_p0 }
  0x46   :  { %p2874_p3 = pnand %p2873_p2, %p2867_p13 }
  0x48   :  { %2877 = shalt.err (!%p2874_p3)
}
  0x49   :  { %115 = dma.hbm_to_vmem [thread:$0]  %s3697_s7, 4096, %s3270_s26, [#allocation17], %s3144_s16, %s3144_s16, %s3145_s20  }
  0x4a   :  { %s3146_s19 = smov [#allocation19]   ;;  %s3147_s21 = smov [#allocation22]  }
  0x4b   :  { %s134_s3 = sshll.u32 %s3146_s19, 4  ;;  %s156_s22 = sshll.u32 %s3147_s21, 4  ;;  %s135_s3 = int_to_ptr.vmem [resolvable:$true] %s134_s3  ;;  %s157_s22 = int_to_ptr.vmem [resolvable:$true] %s156_s22 }
  0x4c   :  { %s2878_s27 = scalar_lea.hbm %s3699_s9, 32 }
  0x4d   :  { %p2879_p4 = scmp.ne.s32.totalorder %s3699_s9, %s2878_s27  ;;  %p2882_p5 = scmp.lt.u32.totalorder %s2878_s27, %s3699_s9 }
  0x4f   :  { %p2884_p6 = pnand %p2882_p5, %p2879_p4 }
  0x51   :  { %2887 = shalt.err (!%p2884_p6)
}
  0x52   :  { %s2888_s7 = scalar_lea.vmem %s135_s3, 32  ;;  %p2893_p8 = scmp.lt.s32.totalorder %s135_s3, %s135_s3 }
  0x53   :  { %p2889_p7 = scmp.ne.s32.totalorder %s135_s3, %s2888_s7  ;;  %p2894_p9 = scmp.lt.s32.totalorder %s2888_s7, %s2888_s7 }
  0x55   :  { %p2895_p10 = por %p2894_p9, %p2893_p8 }
  0x57   :  { %p2896_p11 = pnand %p2895_p10, %p2889_p7 }
  0x59   :  { %2899 = shalt.err (!%p2896_p11)
}
  0x5a   :  { %137 = dma.hbm_to_vmem [thread:$0]  %s3699_s9, 32, %s135_s3, [#allocation20]  }
  0x5b   :  { %s2900_s19 = scalar_lea.hbm %s3701_s11, 16 }
  0x5c   :  { %p2901_p12 = scmp.ne.s32.totalorder %s3701_s11, %s2900_s19  ;;  %p2904_p13 = scmp.lt.u32.totalorder %s2900_s19, %s3701_s11 }
  0x5e   :  { %p2906_p0 = pnand %p2904_p13, %p2901_p12 }
  0x60   :  { %2909 = shalt.err (!%p2906_p0)
}
  0x61   :  { %s2910_s28 = scalar_lea.vmem %s157_s22, 16  ;;  %s2914_s29 = scalar_lea.vmem %s157_s22, 32 }
  0x62   :  { %p2911_p1 = scmp.ne.s32.totalorder %s157_s22, %s2910_s28  ;;  %p2915_p2 = scmp.lt.s32.totalorder %s157_s22, %s157_s22 }
  0x63   :  { %p2916_p3 = scmp.lt.s32.totalorder %s2914_s29, %s2910_s28 }
  0x65   :  { %p2917_p4 = por %p2916_p3, %p2915_p2 }
  0x67   :  { %p2918_p5 = pnand %p2917_p4, %p2911_p1 }
  0x69   :  { %2921 = shalt.err (!%p2918_p5)
}
  0x6a   :  { %159 = dma.hbm_to_vmem [thread:$0]  %s3701_s11, 16, %s157_s22, [#allocation23]  }
  0x6b   :  { %s3148_s15 = smov [#allocation4]   ;;  %s3149_s7 = smov [#allocation9]  }
  0x6c   :  { %s33_s17 = sshll.u32 %s3148_s15, 4  ;;  %s56_s26 = sshll.u32 %s3149_s7, 4  ;;  %s34_s17 = int_to_ptr.vmem [resolvable:$true] %s33_s17  ;;  %s57_s26 = int_to_ptr.vmem [resolvable:$true] %s56_s26 }
  0x6d   :  { %s2922_s24 = scalar_lea.hbm %s3690_s0, 256 }
  0x6e   :  { %p2923_p6 = scmp.ne.s32.totalorder %s3690_s0, %s2922_s24  ;;  %p2926_p7 = scmp.lt.u32.totalorder %s2922_s24, %s3690_s0 }
  0x70   :  { %p2928_p8 = pnand %p2926_p7, %p2923_p6 }
  0x72   :  { %2931 = shalt.err (!%p2928_p8)
}
  0x73   :  { %s2932_s11 = scalar_lea.vmem %s34_s17, 256  ;;  %p2937_p10 = scmp.lt.s32.totalorder %s34_s17, %s34_s17 }
  0x74   :  { %p2933_p9 = scmp.ne.s32.totalorder %s34_s17, %s2932_s11  ;;  %p2938_p11 = scmp.lt.s32.totalorder %s2932_s11, %s2932_s11 }
  0x76   :  { %p2939_p12 = por %p2938_p11, %p2937_p10 }
  0x78   :  { %p2940_p13 = pnand %p2939_p12, %p2933_p9 }
  0x7a   :  { %2943 = shalt.err (!%p2940_p13)
}
  0x7b   :  { %39 = dma.hbm_to_vmem [thread:$0]  %s3690_s0, 256, %s34_s17, [#allocation5], %s3144_s16, %s3144_s16, %s3145_s20  }
  0x7c   :  { %s2944_s9 = scalar_lea.hbm %s3692_s2, 16 }
  0x7d   :  { %p2945_p0 = scmp.ne.s32.totalorder %s3692_s2, %s2944_s9  ;;  %p2948_p1 = scmp.lt.u32.totalorder %s2944_s9, %s3692_s2 }
  0x7f   :  { %p2950_p2 = pnand %p2948_p1, %p2945_p0 }
  0x81   :  { %2953 = shalt.err (!%p2950_p2)
}
  0x82   :  { %s2954_s5 = scalar_lea.vmem %s57_s26, 16  ;;  %s2958_s24 = scalar_lea.vmem %s57_s26, 32 }
  0x83   :  { %p2955_p3 = scmp.ne.s32.totalorder %s57_s26, %s2954_s5  ;;  %p2959_p4 = scmp.lt.s32.totalorder %s57_s26, %s57_s26 }
  0x84   :  { %p2960_p5 = scmp.lt.s32.totalorder %s2958_s24, %s2954_s5 }
  0x86   :  { %p2961_p6 = por %p2960_p5, %p2959_p4 }
  0x88   :  { %p2962_p7 = pnand %p2961_p6, %p2955_p3 }
  0x8a   :  { %2965 = shalt.err (!%p2962_p7)
}
  0x8b   :  { %59 = dma.hbm_to_vmem [thread:$0]  %s3692_s2, 16, %s57_s26, [#allocation8]  }
  0x8c   :  { %s3150_s19 = smov [#allocation12]   ;;  %s3151_s23 = smov [#allocation15]  }
  0x8d   :  { %s78_s21 = sshll.u32 %s3150_s19, 4  ;;  %s100_s25 = sshll.u32 %s3151_s23, 4  ;;  %s79_s21 = int_to_ptr.vmem [resolvable:$true] %s78_s21  ;;  %s101_s25 = int_to_ptr.vmem [resolvable:$true] %s100_s25 }
  0x8e   :  { %s2966_s27 = scalar_lea.hbm %s3694_s4, 16 }
  0x8f   :  { %p2967_p8 = scmp.ne.s32.totalorder %s3694_s4, %s2966_s27  ;;  %p2970_p9 = scmp.lt.u32.totalorder %s2966_s27, %s3694_s4 }
  0x91   :  { %p2972_p10 = pnand %p2970_p9, %p2967_p8 }
  0x93   :  { %2975 = shalt.err (!%p2972_p10)
}
  0x94   :  { %s2976_s2 = scalar_lea.vmem %s79_s21, 16  ;;  %s2980_s26 = scalar_lea.vmem %s79_s21, 32 }
  0x95   :  { %p2977_p11 = scmp.ne.s32.totalorder %s79_s21, %s2976_s2  ;;  %p2981_p12 = scmp.lt.s32.totalorder %s79_s21, %s79_s21 }
  0x96   :  { %p2982_p13 = scmp.lt.s32.totalorder %s2980_s26, %s2976_s2 }
  0x98   :  { %p2983_p0 = por %p2982_p13, %p2981_p12 }
  0x9a   :  { %p2984_p1 = pnand %p2983_p0, %p2977_p11 }
  0x9c   :  { %2987 = shalt.err (!%p2984_p1)
}
  0x9d   :  { %81 = dma.hbm_to_vmem [thread:$0]  %s3694_s4, 16, %s79_s21, [#allocation11]  }
  0x9e   :  { %s2988_s24 = scalar_lea.hbm %s3696_s6, 32 }
  0x9f   :  { %p2989_p2 = scmp.ne.s32.totalorder %s3696_s6, %s2988_s24  ;;  %p2992_p3 = scmp.lt.u32.totalorder %s2988_s24, %s3696_s6 }
  0xa1   :  { %p2994_p4 = pnand %p2992_p3, %p2989_p2 }
  0xa3   :  { %2997 = shalt.err (!%p2994_p4)
}
  0xa4   :  { %s2998_s11 = scalar_lea.vmem %s101_s25, 32  ;;  %p3003_p6 = scmp.lt.s32.totalorder %s101_s25, %s101_s25 }
  0xa5   :  { %p2999_p5 = scmp.ne.s32.totalorder %s101_s25, %s2998_s11  ;;  %p3004_p7 = scmp.lt.s32.totalorder %s2998_s11, %s2998_s11 }
  0xa7   :  { %p3005_p8 = por %p3004_p7, %p3003_p6 }
  0xa9   :  { %p3006_p9 = pnand %p3005_p8, %p2999_p5 }
  0xab   :  { %3009 = shalt.err (!%p3006_p9)
}
  0xac   :  { %103 = dma.hbm_to_vmem [thread:$0]  %s3696_s6, 32, %s101_s25, [#allocation14]  }
  0xad   :  { %s3152_s22 = smov [#allocation18]   ;;  %s3153_s28 = smov [#allocation21]  }
  0xae   :  { %s121_s27 = sshll.u32 %s3152_s22, 4  ;;  %s143_s29 = sshll.u32 %s3153_s28, 4  ;;  %s122_s27 = int_to_ptr.vmem [resolvable:$true] %s121_s27  ;;  %s3382_s29 = int_to_ptr.vmem [resolvable:$true] %s143_s29 }
  0xaf   :  { %s3010_s2 = scalar_lea.hbm %s3698_s8, 4096 }
  0xb0   :  { %p3011_p10 = scmp.ne.s32.totalorder %s3698_s8, %s3010_s2  ;;  %p3014_p11 = scmp.lt.u32.totalorder %s3010_s2, %s3698_s8 }
  0xb2   :  { %p3016_p12 = pnand %p3014_p11, %p3011_p10 }
  0xb4   :  { %3019 = shalt.err (!%p3016_p12)
}
  0xb5   :  { %s3020_s6 = scalar_lea.vmem %s122_s27, 4096  ;;  %p3025_p0 = scmp.lt.s32.totalorder %s122_s27, %s122_s27 }
  0xb6   :  { %p3021_p13 = scmp.ne.s32.totalorder %s122_s27, %s3020_s6  ;;  %p3026_p1 = scmp.lt.s32.totalorder %s3020_s6, %s3020_s6 }
  0xb8   :  { %p3027_p2 = por %p3026_p1, %p3025_p0 }
  0xba   :  { %p3028_p3 = pnand %p3027_p2, %p3021_p13 }
  0xbc   :  { %3031 = shalt.err (!%p3028_p3)
}
  0xbd   :  { %127 = dma.hbm_to_vmem [thread:$0]  %s3698_s8, 4096, %s122_s27, [#allocation17], %s3144_s16, %s3144_s16, %s3145_s20  }
  0xbe   :  { %s3032_s17 = scalar_lea.hbm %s3700_s10, 2048 }
  0xbf   :  { %p3033_p4 = scmp.ne.s32.totalorder %s3700_s10, %s3032_s17  ;;  %p3036_p5 = scmp.lt.u32.totalorder %s3032_s17, %s3700_s10 }
  0xc1   :  { %p3038_p6 = pnand %p3036_p5, %p3033_p4 }
  0xc3   :  { %3041 = shalt.err (!%p3038_p6)
}
  0xc4   :  { %s3042_s21 = scalar_lea.vmem %s3382_s29, 2048  ;;  %p3047_p8 = scmp.lt.s32.totalorder %s3382_s29, %s3382_s29 }
  0xc5   :  { %p3043_p7 = scmp.ne.s32.totalorder %s3382_s29, %s3042_s21  ;;  %p3048_p9 = scmp.lt.s32.totalorder %s3042_s21, %s3042_s21 }
  0xc7   :  { %p3049_p10 = por %p3048_p9, %p3047_p8 }
  0xc9   :  { %p3050_p11 = pnand %p3049_p10, %p3043_p7 }
  0xcb   :  { %3053 = shalt.err (!%p3050_p11)
}
  0xcc   :  { %149 = dma.hbm_to_vmem [thread:$0]  %s3700_s10, 2048, %s3382_s29, [#allocation20], %s3140_s1, %s3140_s1, %s3141_s30  }
  0xcd   :  { %s3154_s20 = smov [#allocation24]   ;;  %s3155_s27 = smov [#allocation25]  }
  0xce   :  { %s165_s22 = sshll.u32 %s3154_s20, 4  ;;  %s178_s28 = sshll.u32 %s3155_s27, 4  ;;  %s166_s22 = int_to_ptr.vmem [resolvable:$true] %s165_s22  ;;  %s179_s28 = int_to_ptr.vmem [resolvable:$true] %s178_s28 }
  0xcf   :  { %s3054_s2 = scalar_lea.hbm %s3702_s12, 1024 }
  0xd0   :  { %p3055_p12 = scmp.ne.s32.totalorder %s3702_s12, %s3054_s2  ;;  %p3058_p13 = scmp.lt.u32.totalorder %s3054_s2, %s3702_s12 }
  0xd2   :  { %p3060_p0 = pnand %p3058_p13, %p3055_p12 }
  0xd4   :  { %3063 = shalt.err (!%p3060_p0)
}
  0xd5   :  { %s3064_s10 = scalar_lea.vmem %s166_s22, 1024  ;;  %p3069_p2 = scmp.lt.s32.totalorder %s166_s22, %s166_s22 }
  0xd6   :  { %p3065_p1 = scmp.ne.s32.totalorder %s166_s22, %s3064_s10  ;;  %p3070_p3 = scmp.lt.s32.totalorder %s3064_s10, %s3064_s10 }
  0xd8   :  { %p3071_p4 = por %p3070_p3, %p3069_p2 }
  0xda   :  { %p3072_p5 = pnand %p3071_p4, %p3065_p1 }
  0xdc   :  { %3075 = shalt.err (!%p3072_p5)
}
  0xdd   :  { %171 = dma.hbm_to_vmem [thread:$0]  %s3702_s12, 1024, %s166_s22, [#allocation23], %s3140_s1, %s3140_s1, %s3141_s30  }
  0xde   :  { %s3076_s24 = scalar_lea.hbm %s3703_s13, 16 }
  0xdf   :  { %p3077_p6 = scmp.ne.s32.totalorder %s3703_s13, %s3076_s24  ;;  %p3080_p7 = scmp.lt.u32.totalorder %s3076_s24, %s3703_s13 }
  0xe1   :  { %p3082_p8 = pnand %p3080_p7, %p3077_p6 }
  0xe3   :  { %3085 = shalt.err (!%p3082_p8)
}
  0xe4   :  { %s3086_s11 = scalar_lea.vmem %s179_s28, 16  ;;  %s3090_s4 = scalar_lea.vmem %s179_s28, 32 }
  0xe5   :  { %p3087_p9 = scmp.ne.s32.totalorder %s179_s28, %s3086_s11  ;;  %p3091_p10 = scmp.lt.s32.totalorder %s179_s28, %s179_s28 }
  0xe6   :  { %p3092_p11 = scmp.lt.s32.totalorder %s3090_s4, %s3086_s11 }
  0xe8   :  { %p3093_p12 = por %p3092_p11, %p3091_p10 }
  0xea   :  { %p3094_p13 = pnand %p3093_p12, %p3087_p9 }
  0xec   :  { %3097 = shalt.err (!%p3094_p13)
}
  0xed   :  { %181 = dma.hbm_to_vmem [thread:$0]  %s3703_s13, 16, %s179_s28, [#allocation26]  }
  0xee   :  { %3120 = dma.done.wait [#allocation5], 256  }
  0xef   :  { %3121 = vsyncadd [#allocation5], 4294967040 }
  0xf0   :  { %3122 = dma.done.wait [#allocation8], 80  }
  0xf1   :  { %3123 = vsyncadd [#allocation8], 4294967216 }
  0xf2   :  { %3124 = dma.done.wait [#allocation11], 528  }
  0xf3   :  { %3125 = vsyncadd [#allocation11], 4294966768 }
  0xf4   :  { %3126 = dma.done.wait [#allocation14], 2080  }
  0xf5   :  { %3127 = vsyncadd [#allocation14], 4294965216 }
  0xf6   :  { %3128 = dma.done.wait [#allocation17], 8192  }
  0xf7   :  { %3129 = vsyncadd [#allocation17], 4294959104 }
  0xf8   :  { %3130 = dma.done.wait [#allocation20], 2080  }
  0xf9   :  { %3131 = vsyncadd [#allocation20], 4294965216 }
  0xfa   :  { %3132 = dma.done.wait [#allocation23], 1040  }
  0xfb   :  { %3133 = vsyncadd [#allocation23], 4294966256 }
  0xfc   :  { %3134 = dma.done.wait [#allocation26], 16  }
  0xfd   :  { %3135 = vsyncadd [#allocation26], 4294967280  ;;  %v231_v0 = vld [vmem:[#allocation4] sm:$0xff]  ;;  %v313_v1 = vld [vmem:[#allocation7] sm:$0xf]  ;;  %vm370_vm0 = vcmask 1043456  }
  0xfe   :  { %233 = vxpose.xlu0.b32.start.end [1/1] (short) %v231_v0, 128  ;;  %2617 = vmatprep.subr.msk.bf16.mxu0 %vm370_vm0, %v313_v1  ;;  %v372_v2 = vsel %vm370_vm0, %v313_v1, 0  ;;  %v232_v3 = vld [vmem:[#allocation4 + $0x8] sm:$0xff]  ;;  %v2642_v4 = vld [vmem:[#allocation10] sm:$0xff]   ;;  %vm321_vm1 = vcmask 64512   ;;  %v2643_v47 = vld [vmem:[#allocation10 + $0x8] sm:$0xff]   ;;  %vm622_vm2 = vcmask 523264  }
  0xff   :  { %2618 = vmatprep.subr.msk.bf16.mxu1 %vm370_vm0, %v313_v1  ;;  %2522 = vmatpush3.bf16.msra.mxu0 %v372_v2  ;;  %v2644_v49 = vld [vmem:[#allocation10 + $0x10] sm:$0xff]   ;;  %v2645_v52 = vld [vmem:[#allocation10 + $0x18] sm:$0xff]   ;;  %v2646_v56 = vld [vmem:[#allocation13] ss:$8 sps:$4 sm:$0xff]   ;;  %vm1355_vm3 = vcmask 1041409   ;;  %vm1357_vm4 = vcmask 1043459  }
 0x100   :  { %2616 = vmatpush3.bf16.msra.mxu1 %v372_v2  ;;  %v2648_v57 = vld [vmem:[#allocation13 + $0x4] ss:$8 sps:$4 sm:$0xff]   ;;  %v2651_v58 = vld [vmem:[#allocation13 + $0x14] ss:$8 sps:$4 sm:$0xff]   ;;  %v2649_v60 = vld [vmem:[#allocation13 + $0x10] ss:$8 sps:$4 sm:$0xff]  }
 0x101   :  { %2555 = vmatprep.subr.bf16.mxu1 %v2642_v4  ;;  %988 = vmatprep.subr.bf16.mxu0 %v2648_v57  ;;  %v3462_v59 = vld [vmem:[#allocation9] ss:$0 sm:$0xff]  ;;  %v2654_v61 = vld [vmem:[#allocation13 + $0x24] ss:$8 sps:$4 sm:$0xff]   ;;  %vm1359_vm5 = vcmask 1045509   ;;  %vm1361_vm6 = vcmask 1047559  }
 0x102   :  { %vm3159_vm7 = vmmov 0   ;;  %s3160_s13 = smov [#allocation27]  }
 0x103   :  { %s2291_s30 = sshll.u32 %s3160_s13, 4  ;;  %s2292_s30 = int_to_ptr.vmem [resolvable:$true] %s2291_s30 }
 0x104   :  { %s3098_s21 = scalar_lea.vmem %s2292_s30, 32  ;;  %p3103_p1 = scmp.lt.s32.totalorder %s2292_s30, %s2292_s30 }
 0x105   :  { %p3099_p0 = scmp.ne.s32.totalorder %s2292_s30, %s3098_s21  ;;  %p3104_p2 = scmp.lt.s32.totalorder %s3098_s21, %s3098_s21 }
 0x107   :  { %p3105_p3 = por %p3104_p2, %p3103_p1 }
 0x109   :  { %p3106_p4 = pnand %p3105_p3, %p3099_p0 }
 0x13b   :  { %265 = vxpose.xlu0.b32.start.end [1/1] (short) %v232_v3, 128  ;;  %v2652_v3 = vld [vmem:[#allocation13 + $0x20] ss:$8 sps:$4 sm:$0xff]  }
 0x17e   :  { %v249_v5 = vpop.trf.xlu0 }
 0x182   :  { %v250_v6 = vpop.trf.xlu0 }
 0x183   :  { %v297_v7 = vpack.c.bf16 %v250_v6, %v249_v5  ;;  %v2657_v6 = vld [vmem:[#allocation13 + $0x34] ss:$8 sps:$4 sm:$0xff]  }
 0x185   :  { %2523 = vmatprep.mubr.msk.bf16.mxu0 %vm321_vm1, %v297_v7 }
 0x186   :  { %v251_v8 = vpop.trf.xlu0 }
 0x18a   :  { %v252_v9 = vpop.trf.xlu0 }
 0x18b   :  { %v298_v10 = vpack.c.bf16 %v252_v9, %v251_v8 }
 0x18d   :  { %2524 = vmatmul.mubr.msk.bf16.vlgmr.msra.gmra.mrb[0].mxu0 %vm321_vm1, %v298_v10 }
 0x18e   :  { %v253_v11 = vpop.trf.xlu0  ;;  %989 = vmatpush1.bf16.msra.mxu0 %v2646_v56 }
 0x18f   :  { %990 = vmatprep.subr.bf16.mxu0 %v2651_v58 }
 0x192   :  { %v254_v12 = vpop.trf.xlu0  ;;  %991 = vmatpush1.bf16.msra.mxu0 %v2649_v60 }
 0x193   :  { %v299_v13 = vpack.c.bf16 %v254_v12, %v253_v11  ;;  %992 = vmatprep.subr.bf16.mxu0 %v2654_v61  ;;  %v2655_v12 = vld [vmem:[#allocation13 + $0x30] ss:$8 sps:$4 sm:$0xff]  }
 0x195   :  { %2527 = vmatprep.mubr.msk.bf16.mxu0 %vm321_vm1, %v299_v13 }
 0x196   :  { %v255_v14 = vpop.trf.xlu0  ;;  %993 = vmatpush1.bf16.msra.mxu0 %v2652_v3 }
 0x197   :  { %994 = vmatprep.subr.bf16.mxu0 %v2657_v6 }
 0x19a   :  { %v256_v15 = vpop.trf.xlu0  ;;  %995 = vmatpush1.bf16.msra.mxu0 %v2655_v12 }
 0x19b   :  { %v300_v16 = vpack.c.bf16 %v256_v15, %v255_v14  ;;  %v2660_v14 = vld [vmem:[#allocation13 + $0x44] ss:$8 sps:$4 sm:$0xff]  }
 0x19c   :  { %996 = vmatprep.subr.bf16.mxu0 %v2660_v14 }
 0x19d   :  { %2528 = vmatmul.mubr.msk.bf16.gmra.mrb[4].mxu0 %vm321_vm1, %v300_v16  ;;  %v2658_v16 = vld [vmem:[#allocation13 + $0x40] ss:$8 sps:$4 sm:$0xff]  }
 0x19e   :  { %v257_v17 = vpop.trf.xlu0  ;;  %997 = vmatpush1.bf16.msra.mxu0 %v2658_v16 }
 0x1a2   :  { %v258_v18 = vpop.trf.xlu0 }
 0x1a3   :  { %v301_v19 = vpack.c.bf16 %v258_v18, %v257_v17  ;;  %v2663_v17 = vld [vmem:[#allocation13 + $0x54] ss:$8 sps:$4 sm:$0xff]   ;;  %v2661_v18 = vld [vmem:[#allocation13 + $0x50] ss:$8 sps:$4 sm:$0xff]  }
 0x1a4   :  { %998 = vmatprep.subr.bf16.mxu0 %v2663_v17 }
 0x1a5   :  { %2531 = vmatprep.mubr.msk.bf16.mxu0 %vm321_vm1, %v301_v19  ;;  %v2666_v19 = vld [vmem:[#allocation13 + $0x64] ss:$8 sps:$4 sm:$0xff]   ;;  %999 = vmatpush1.bf16.msra.mxu0 %v2661_v18 }
 0x1a6   :  { %v259_v20 = vpop.trf.xlu0  ;;  %1000 = vmatprep.subr.bf16.mxu0 %v2666_v19 }
 0x1aa   :  { %v260_v21 = vpop.trf.xlu0 }
 0x1ab   :  { %v302_v22 = vpack.c.bf16 %v260_v21, %v259_v20 }
 0x1ad   :  { %2532 = vmatmul.mubr.msk.bf16.gmra.mrb[8].mxu0 %vm321_vm1, %v302_v22 }
 0x1ae   :  { %v261_v23 = vpop.trf.xlu0 }
 0x1b2   :  { %v262_v24 = vpop.trf.xlu0 }
 0x1b3   :  { %v303_v25 = vpack.c.bf16 %v262_v24, %v261_v23 }
 0x1b5   :  { %2535 = vmatprep.mubr.msk.bf16.mxu0 %vm321_vm1, %v303_v25  ;;  %v2664_v25 = vld [vmem:[#allocation13 + $0x60] ss:$8 sps:$4 sm:$0xff]  }
 0x1b6   :  { %v263_v26 = vpop.trf.xlu0  ;;  %1001 = vmatpush1.bf16.msra.mxu0 %v2664_v25 }
 0x1ba   :  { %v264_v27 = vpop.trf.xlu0 }
 0x1bb   :  { %v304_v28 = vpack.c.bf16 %v264_v27, %v263_v26 }
 0x1bd   :  { %2536 = vmatmul.mubr.msk.bf16.gmra.mrb[12].mxu0 %vm321_vm1, %v304_v28 }
 0x1be   :  { %v281_v29 = vpop.trf.xlu0 }
 0x1c2   :  { %v282_v30 = vpop.trf.xlu0 }
 0x1c3   :  { %v305_v31 = vpack.c.bf16 %v282_v30, %v281_v29 }
 0x1c5   :  { %2539 = vmatprep.mubr.msk.bf16.mxu0 %vm321_vm1, %v305_v31 }
 0x1c6   :  { %v283_v32 = vpop.trf.xlu0 }
 0x1ca   :  { %v284_v33 = vpop.trf.xlu0 }
 0x1cb   :  { %v306_v34 = vpack.c.bf16 %v284_v33, %v283_v32 }
 0x1cd   :  { %2540 = vmatmul.mubr.msk.bf16.gmra.mrb[16].mxu0 %vm321_vm1, %v306_v34 }
 0x1ce   :  { %v285_v35 = vpop.trf.xlu0 }
 0x1d2   :  { %v286_v36 = vpop.trf.xlu0 }
 0x1d3   :  { %v307_v37 = vpack.c.bf16 %v286_v36, %v285_v35 }
 0x1d5   :  { %2543 = vmatprep.mubr.msk.bf16.mxu0 %vm321_vm1, %v307_v37 }
 0x1d6   :  { %v287_v38 = vpop.trf.xlu0 }
 0x1da   :  { %v288_v39 = vpop.trf.xlu0 }
 0x1db   :  { %v308_v40 = vpack.c.bf16 %v288_v39, %v287_v38 }
 0x1dd   :  { %2544 = vmatmul.mubr.msk.bf16.gmra.mrb[20].mxu0 %vm321_vm1, %v308_v40 }
 0x1de   :  { %v289_v41 = vpop.trf.xlu0 }
 0x1e2   :  { %v290_v42 = vpop.trf.xlu0 }
 0x1e3   :  { %v309_v43 = vpack.c.bf16 %v290_v42, %v289_v41 }
 0x1e5   :  { %2547 = vmatprep.mubr.msk.bf16.mxu1 %vm321_vm1, %v309_v43 }
 0x1e6   :  { %v291_v44 = vpop.trf.xlu0 }
 0x1ea   :  { %v292_v45 = vpop.trf.xlu0 }
 0x1eb   :  { %v310_v46 = vpack.c.bf16 %v292_v45, %v291_v44 }
 0x1ed   :  { %2548 = vmatmul.mubr.msk.bf16.vlgmr.msra.gmra.mrb[0].mxu1 %vm321_vm1, %v310_v46 }
 0x1ee   :  { %v293_v48 = vpop.trf.xlu0  ;;  %2556 = vmatpush3.bf16.msra.mxu1 %v2642_v4 }
 0x1ef   :  { %2557 = vmatprep.subr.bf16.mxu1 %v2643_v47 }
 0x1f2   :  { %v294_v50 = vpop.trf.xlu0  ;;  %2558 = vmatpush3.bf16.msra.mxu1 %v2643_v47 }
 0x1f3   :  { %v311_v51 = vpack.c.bf16 %v294_v50, %v293_v48  ;;  %2559 = vmatprep.subr.bf16.mxu1 %v2644_v49 }
 0x1f5   :  { %2551 = vmatprep.mubr.msk.bf16.mxu1 %vm321_vm1, %v311_v51 }
 0x1f6   :  { %v295_v53 = vpop.trf.xlu0  ;;  %2560 = vmatpush3.bf16.msra.mxu1 %v2644_v49 }
 0x1f7   :  { %2561 = vmatprep.subr.bf16.mxu1 %v2645_v52 }
 0x1fa   :  { %v296_v54 = vpop.trf.xlu0  ;;  %2562 = vmatpush3.bf16.msra.mxu1 %v2645_v52 }
 0x1fb   :  { %v312_v55 = vpack.c.bf16 %v296_v54, %v295_v53 }
 0x1fd   :  { %2552 = vmatmul.mubr.msk.bf16.gmra.mrb[4].mxu1 %vm321_vm1, %v312_v55 }
 0x260   :  { %v2525_v62 = vpop.f32.mrb[0].mxu0 }
 0x261   :  { %v417_v63 = vadd.f32 %v2525_v62, %v3462_v59  ;;  %v408_v0 = vpop.f32.mrb[1].mxu0 }
 0x262   :  { %v409_v1 = vadd.f32 %v3462_v59, %v408_v0  ;;  %v2526_v2 = vpop.f32.mrb[2].mxu0 }
 0x263   :  { %v420_v4 = vadd.f32 %v2526_v2, %v3462_v59  ;;  %v411_v5 = vpop.f32.mrb[3].mxu0  ;;  %v537_v8 = vmax.f32 %v417_v63, 0.0 }
 0x264   :  { %v412_v7 = vadd.f32 %v3462_v59, %v411_v5  ;;  %v535_v10 = vmax.f32 %v409_v1, 0.0 }
 0x265   :  { %v538_v9 = vmax.f32 %v420_v4, 0.0 }
 0x266   :  { %v536_v11 = vmax.f32 %v412_v7, 0.0 }
 0x267   :  { %v568_v13 = vpack.c.bf16 %v538_v9, %v537_v8 }
 0x268   :  { %v567_v15 = vpack.c.bf16 %v536_v11, %v535_v10 }
 0x26a   :  { %2563 = vmatprep.mubr.msk.bf16.mxu1 %vm622_vm2, %v567_v15 }
 0x26b   :  { %2564 = vmatmul.mubr.msk.bf16.vlgmr.msra.gmra.mrb[8].mxu1 %vm622_vm2, %v568_v13 }
 0x270   :  { %v2529_v20 = vpop.f32.mrb[4].mxu0 }
 0x271   :  { %v433_v21 = vadd.f32 %v2529_v20, %v3462_v59  ;;  %v424_v22 = vpop.f32.mrb[5].mxu0 }
 0x272   :  { %v425_v23 = vadd.f32 %v3462_v59, %v424_v22  ;;  %v2530_v24 = vpop.f32.mrb[6].mxu0 }
 0x273   :  { %v436_v26 = vadd.f32 %v2530_v24, %v3462_v59  ;;  %v427_v27 = vpop.f32.mrb[7].mxu0  ;;  %v541_v29 = vmax.f32 %v433_v21, 0.0 }
 0x274   :  { %v428_v28 = vadd.f32 %v3462_v59, %v427_v27  ;;  %v539_v31 = vmax.f32 %v425_v23, 0.0 }
 0x275   :  { %v542_v30 = vmax.f32 %v436_v26, 0.0 }
 0x276   :  { %v540_v32 = vmax.f32 %v428_v28, 0.0 }
 0x277   :  { %v570_v33 = vpack.c.bf16 %v542_v30, %v541_v29 }
 0x278   :  { %v569_v34 = vpack.c.bf16 %v540_v32, %v539_v31 }
 0x27a   :  { %2567 = vmatprep.mubr.msk.bf16.mxu1 %vm622_vm2, %v569_v34 }
 0x27b   :  { %2568 = vmatmul.mubr.msk.bf16.gmra.mrb[12].mxu1 %vm622_vm2, %v570_v33  ;;  %v2669_v33 = vld [vmem:[#allocation13 + $0x74] ss:$8 sps:$4 sm:$0xff]  }
 0x27c   :  { %1002 = vmatprep.subr.bf16.mxu0 %v2669_v33 }
 0x280   :  { %v2533_v35 = vpop.f32.mrb[8].mxu0 }
 0x281   :  { %v449_v36 = vadd.f32 %v2533_v35, %v3462_v59  ;;  %v440_v37 = vpop.f32.mrb[9].mxu0 }
 0x282   :  { %v441_v38 = vadd.f32 %v3462_v59, %v440_v37  ;;  %v2534_v39 = vpop.f32.mrb[10].mxu0 }
 0x283   :  { %v452_v40 = vadd.f32 %v2534_v39, %v3462_v59  ;;  %v443_v41 = vpop.f32.mrb[11].mxu0  ;;  %v545_v43 = vmax.f32 %v449_v36, 0.0  ;;  %v2667_v36 = vld [vmem:[#allocation13 + $0x70] ss:$8 sps:$4 sm:$0xff]  }
 0x284   :  { %v444_v42 = vadd.f32 %v3462_v59, %v443_v41  ;;  %v543_v45 = vmax.f32 %v441_v38, 0.0  ;;  %1003 = vmatpush1.bf16.msra.mxu0 %v2667_v36 }
 0x285   :  { %v546_v44 = vmax.f32 %v452_v40, 0.0 }
 0x286   :  { %v544_v46 = vmax.f32 %v444_v42, 0.0 }
 0x287   :  { %v572_v47 = vpack.c.bf16 %v546_v44, %v545_v43  ;;  %v3156_v43 = vmov 0  }
 0x288   :  { %v571_v48 = vpack.c.bf16 %v544_v46, %v543_v45  ;;  %1020 = vmatprep.mubr.bf16.mxu0 %v3156_v43 }
 0x28a   :  { %2571 = vmatprep.mubr.msk.bf16.mxu1 %vm622_vm2, %v571_v48 }
 0x28b   :  { %2572 = vmatmul.mubr.msk.bf16.gmra.mrb[16].mxu1 %vm622_vm2, %v572_v47 }
 0x290   :  { %v2537_v49 = vpop.f32.mrb[12].mxu0 }
 0x291   :  { %v465_v50 = vadd.f32 %v2537_v49, %v3462_v59  ;;  %v456_v51 = vpop.f32.mrb[13].mxu0 }
 0x292   :  { %v457_v52 = vadd.f32 %v3462_v59, %v456_v51  ;;  %v2538_v53 = vpop.f32.mrb[14].mxu0 }
 0x293   :  { %v468_v54 = vadd.f32 %v2538_v53, %v3462_v59  ;;  %v459_v55 = vpop.f32.mrb[15].mxu0  ;;  %v549_v57 = vmax.f32 %v465_v50, 0.0 }
 0x294   :  { %v460_v56 = vadd.f32 %v3462_v59, %v459_v55  ;;  %v547_v60 = vmax.f32 %v457_v52, 0.0 }
 0x295   :  { %v550_v58 = vmax.f32 %v468_v54, 0.0 }
 0x296   :  { %v548_v61 = vmax.f32 %v460_v56, 0.0 }
 0x297   :  { %v574_v62 = vpack.c.bf16 %v550_v58, %v549_v57 }
 0x298   :  { %v573_v63 = vpack.c.bf16 %v548_v61, %v547_v60  ;;  %v3513_v60 = vld [vmem:[#allocation12] ss:$0 sm:$0xff] }
 0x29a   :  { %2575 = vmatprep.mubr.msk.bf16.mxu1 %vm622_vm2, %v573_v63 }
 0x29b   :  { %2576 = vmatmul.mubr.msk.bf16.gmra.mrb[20].mxu1 %vm622_vm2, %v574_v62 }
 0x2a0   :  { %v2541_v0 = vpop.f32.mrb[16].mxu0 }
 0x2a1   :  { %v481_v1 = vadd.f32 %v2541_v0, %v3462_v59  ;;  %v472_v2 = vpop.f32.mrb[17].mxu0 }
 0x2a2   :  { %v473_v3 = vadd.f32 %v3462_v59, %v472_v2  ;;  %v2542_v4 = vpop.f32.mrb[18].mxu0 }
 0x2a3   :  { %v484_v5 = vadd.f32 %v2542_v4, %v3462_v59  ;;  %v475_v6 = vpop.f32.mrb[19].mxu0  ;;  %v553_v8 = vmax.f32 %v481_v1, 0.0 }
 0x2a4   :  { %v476_v7 = vadd.f32 %v3462_v59, %v475_v6  ;;  %v551_v10 = vmax.f32 %v473_v3, 0.0 }
 0x2a5   :  { %v554_v9 = vmax.f32 %v484_v5, 0.0 }
 0x2a6   :  { %v552_v11 = vmax.f32 %v476_v7, 0.0 }
 0x2a7   :  { %v576_v12 = vpack.c.bf16 %v554_v9, %v553_v8 }
 0x2a8   :  { %v575_v13 = vpack.c.bf16 %v552_v11, %v551_v10 }
 0x2aa   :  { %2579 = vmatprep.mubr.msk.bf16.mxu1 %vm622_vm2, %v575_v13 }
 0x2ab   :  { %2580 = vmatmul.mubr.msk.bf16.gmra.mrb[24].mxu1 %vm622_vm2, %v576_v12 }
 0x2b0   :  { %v2545_v14 = vpop.f32.mrb[20].mxu0 }
 0x2b1   :  { %v497_v15 = vadd.f32 %v2545_v14, %v3462_v59  ;;  %v488_v16 = vpop.f32.mrb[21].mxu0 }
 0x2b2   :  { %v489_v17 = vadd.f32 %v3462_v59, %v488_v16  ;;  %v2546_v18 = vpop.f32.mrb[22].mxu0 }
 0x2b3   :  { %v500_v19 = vadd.f32 %v2546_v18, %v3462_v59  ;;  %v491_v20 = vpop.f32.mrb[23].mxu0  ;;  %v557_v22 = vmax.f32 %v497_v15, 0.0 }
 0x2b4   :  { %v492_v21 = vadd.f32 %v3462_v59, %v491_v20  ;;  %v555_v24 = vmax.f32 %v489_v17, 0.0 }
 0x2b5   :  { %v558_v23 = vmax.f32 %v500_v19, 0.0 }
 0x2b6   :  { %v556_v25 = vmax.f32 %v492_v21, 0.0 }
 0x2b7   :  { %v578_v26 = vpack.c.bf16 %v558_v23, %v557_v22 }
 0x2b8   :  { %v577_v27 = vpack.c.bf16 %v556_v25, %v555_v24 }
 0x2ba   :  { %2583 = vmatprep.mubr.msk.bf16.mxu1 %vm622_vm2, %v577_v27 }
 0x2bb   :  { %2584 = vmatmul.mubr.msk.bf16.gmra.mrb[28].mxu1 %vm622_vm2, %v578_v26 }
 0x2c0   :  { %v2549_v28 = vpop.f32.mrb[0].mxu1 }
 0x2c1   :  { %v513_v29 = vadd.f32 %v2549_v28, %v3462_v59  ;;  %v504_v30 = vpop.f32.mrb[1].mxu1 }
 0x2c2   :  { %v505_v31 = vadd.f32 %v3462_v59, %v504_v30  ;;  %v2550_v32 = vpop.f32.mrb[2].mxu1 }
 0x2c3   :  { %v516_v34 = vadd.f32 %v2550_v32, %v3462_v59  ;;  %v507_v35 = vpop.f32.mrb[3].mxu1  ;;  %v561_v38 = vmax.f32 %v513_v29, 0.0 }
 0x2c4   :  { %v508_v37 = vadd.f32 %v3462_v59, %v507_v35  ;;  %v559_v40 = vmax.f32 %v505_v31, 0.0 }
 0x2c5   :  { %v562_v39 = vmax.f32 %v516_v34, 0.0 }
 0x2c6   :  { %v560_v41 = vmax.f32 %v508_v37, 0.0 }
 0x2c7   :  { %v580_v42 = vpack.c.bf16 %v562_v39, %v561_v38 }
 0x2c8   :  { %v579_v44 = vpack.c.bf16 %v560_v41, %v559_v40 }
 0x2ca   :  { %2587 = vmatprep.mubr.msk.bf16.mxu1 %vm622_vm2, %v579_v44 }
 0x2cb   :  { %2588 = vmatmul.mubr.msk.bf16.gmra.mrb[32].mxu1 %vm622_vm2, %v580_v42 }
 0x2d0   :  { %v2553_v45 = vpop.f32.mrb[4].mxu1 }
 0x2d1   :  { %v529_v46 = vadd.f32 %v2553_v45, %v3462_v59  ;;  %v520_v47 = vpop.f32.mrb[5].mxu1 }
 0x2d2   :  { %v521_v48 = vadd.f32 %v3462_v59, %v520_v47  ;;  %v2554_v49 = vpop.f32.mrb[6].mxu1 }
 0x2d3   :  { %v532_v50 = vadd.f32 %v2554_v49, %v3462_v59  ;;  %v523_v51 = vpop.f32.mrb[7].mxu1  ;;  %v565_v53 = vmax.f32 %v529_v46, 0.0 }
 0x2d4   :  { %v524_v52 = vadd.f32 %v3462_v59, %v523_v51  ;;  %v563_v55 = vmax.f32 %v521_v48, 0.0 }
 0x2d5   :  { %v566_v54 = vmax.f32 %v532_v50, 0.0 }
 0x2d6   :  { %v564_v56 = vmax.f32 %v524_v52, 0.0 }
 0x2d7   :  { %v582_v57 = vpack.c.bf16 %v566_v54, %v565_v53 }
 0x2d8   :  { %v581_v58 = vpack.c.bf16 %v564_v56, %v563_v55 }
 0x2da   :  { %2591 = vmatprep.mubr.msk.bf16.mxu1 %vm622_vm2, %v581_v58 }
 0x2db   :  { %2592 = vmatmul.mubr.msk.bf16.gmra.mrb[36].mxu1 %vm622_vm2, %v582_v57 }
 0x33e   :  { %v2565_v61 = vpop.f32.mrb[8].mxu1 }
 0x33f   :  { %v714_v62 = vadd.f32 %v2565_v61, %v3513_v60  ;;  %v705_v63 = vpop.f32.mrb[9].mxu1 }
 0x340   :  { %v706_v0 = vadd.f32 %v3513_v60, %v705_v63  ;;  %v2566_v1 = vpop.f32.mrb[10].mxu1 }
 0x341   :  { %v717_v59 = vadd.f32 %v2566_v1, %v3513_v60  ;;  %v708_v2 = vpop.f32.mrb[11].mxu1  ;;  %v834_v4 = vmax.f32 %v714_v62, 0.0 }
 0x342   :  { %v709_v3 = vadd.f32 %v3513_v60, %v708_v2  ;;  %v832_v6 = vmax.f32 %v706_v0, 0.0 }
 0x343   :  { %v835_v5 = vmax.f32 %v717_v59, 0.0 }
 0x344   :  { %v833_v7 = vmax.f32 %v709_v3, 0.0 }
 0x345   :  { %v865_v8 = vpack.c.bf16 %v835_v5, %v834_v4 }
 0x346   :  { %v864_v9 = vpack.c.bf16 %v833_v7, %v832_v6 }
 0x348   :  { %1021 = vmatmul.mubr.bf16.vlgmr.msra.gmra.mrb[24].mxu0 %v864_v9 }
 0x349   :  { %1030 = vmatprep.mubr.bf16.mxu0 %v3156_v43 }
 0x34e   :  { %v2569_v10 = vpop.f32.mrb[12].mxu1 }
 0x34f   :  { %v730_v11 = vadd.f32 %v2569_v10, %v3513_v60  ;;  %v721_v12 = vpop.f32.mrb[13].mxu1 }
 0x350   :  { %v722_v13 = vadd.f32 %v3513_v60, %v721_v12  ;;  %v2570_v14 = vpop.f32.mrb[14].mxu1  ;;  %1031 = vmatmul.mubr.bf16.gmra.mrb[28].mxu0 %v865_v8 }
 0x351   :  { %v733_v15 = vadd.f32 %v2570_v14, %v3513_v60  ;;  %v724_v16 = vpop.f32.mrb[15].mxu1  ;;  %1040 = vmatprep.mubr.bf16.mxu0 %v3156_v43  ;;  %v838_v18 = vmax.f32 %v730_v11, 0.0 }
 0x352   :  { %v725_v17 = vadd.f32 %v3513_v60, %v724_v16  ;;  %v836_v20 = vmax.f32 %v722_v13, 0.0 }
 0x353   :  { %v839_v19 = vmax.f32 %v733_v15, 0.0 }
 0x354   :  { %v837_v21 = vmax.f32 %v725_v17, 0.0 }
 0x355   :  { %v867_v22 = vpack.c.bf16 %v839_v19, %v838_v18 }
 0x356   :  { %v866_v23 = vpack.c.bf16 %v837_v21, %v836_v20 }
 0x358   :  { %1041 = vmatmul.mubr.bf16.gmra.mrb[32].mxu0 %v866_v23 }
 0x359   :  { %1050 = vmatprep.mubr.bf16.mxu0 %v3156_v43 }
 0x35e   :  { %v2573_v24 = vpop.f32.mrb[16].mxu1 }
 0x35f   :  { %v746_v25 = vadd.f32 %v2573_v24, %v3513_v60  ;;  %v737_v26 = vpop.f32.mrb[17].mxu1 }
 0x360   :  { %v738_v27 = vadd.f32 %v3513_v60, %v737_v26  ;;  %v2574_v28 = vpop.f32.mrb[18].mxu1  ;;  %1051 = vmatmul.mubr.bf16.gmra.mrb[36].mxu0 %v867_v22 }
 0x361   :  { %v749_v29 = vadd.f32 %v2574_v28, %v3513_v60  ;;  %v740_v30 = vpop.f32.mrb[19].mxu1  ;;  %1060 = vmatprep.mubr.bf16.mxu0 %v3156_v43  ;;  %v842_v32 = vmax.f32 %v746_v25, 0.0 }
 0x362   :  { %v741_v31 = vadd.f32 %v3513_v60, %v740_v30  ;;  %v840_v34 = vmax.f32 %v738_v27, 0.0 }
 0x363   :  { %v843_v33 = vmax.f32 %v749_v29, 0.0 }
 0x364   :  { %v841_v35 = vmax.f32 %v741_v31, 0.0 }
 0x365   :  { %v869_v36 = vpack.c.bf16 %v843_v33, %v842_v32 }
 0x366   :  { %v868_v37 = vpack.c.bf16 %v841_v35, %v840_v34 }
 0x368   :  { %1061 = vmatmul.mubr.bf16.gmra.mrb[40].mxu0 %v868_v37 }
 0x369   :  { %1070 = vmatprep.mubr.bf16.mxu0 %v3156_v43 }
 0x36e   :  { %v2577_v38 = vpop.f32.mrb[20].mxu1 }
 0x36f   :  { %v762_v39 = vadd.f32 %v2577_v38, %v3513_v60  ;;  %v753_v40 = vpop.f32.mrb[21].mxu1 }
 0x370   :  { %v754_v41 = vadd.f32 %v3513_v60, %v753_v40  ;;  %v2578_v42 = vpop.f32.mrb[22].mxu1  ;;  %1071 = vmatmul.mubr.bf16.gmra.mrb[44].mxu0 %v869_v36 }
 0x371   :  { %v765_v44 = vadd.f32 %v2578_v42, %v3513_v60  ;;  %v756_v45 = vpop.f32.mrb[23].mxu1  ;;  %1080 = vmatprep.mubr.bf16.mxu0 %v3156_v43  ;;  %v846_v47 = vmax.f32 %v762_v39, 0.0 }
 0x372   :  { %v757_v46 = vadd.f32 %v3513_v60, %v756_v45  ;;  %v844_v49 = vmax.f32 %v754_v41, 0.0 }
 0x373   :  { %v847_v48 = vmax.f32 %v765_v44, 0.0 }
 0x374   :  { %v845_v50 = vmax.f32 %v757_v46, 0.0 }
 0x375   :  { %v871_v51 = vpack.c.bf16 %v847_v48, %v846_v47  ;;  %v2672_v47 = vld [vmem:[#allocation18 + $0x4] ss:$8 sps:$4 sm:$0xff]   ;;  %v2670_v48 = vld [vmem:[#allocation18] ss:$8 sps:$4 sm:$0xff]  }
 0x376   :  { %v870_v52 = vpack.c.bf16 %v845_v50, %v844_v49  ;;  %1736 = vmatprep.subr.bf16.mxu1 %v2672_v47  ;;  %v2675_v49 = vld [vmem:[#allocation18 + $0x14] ss:$8 sps:$4 sm:$0xff]   ;;  %v2673_v50 = vld [vmem:[#allocation18 + $0x10] ss:$8 sps:$4 sm:$0xff]  }
 0x377   :  { %1737 = vmatpush1.bf16.msra.mxu1 %v2670_v48 }
 0x378   :  { %1081 = vmatmul.mubr.bf16.gmra.mrb[48].mxu0 %v870_v52  ;;  %1738 = vmatprep.subr.bf16.mxu1 %v2675_v49  ;;  %v898_v52 = vlaneseq }
 0x379   :  { %1090 = vmatprep.mubr.bf16.mxu0 %v3156_v43 }
 0x37b   :  { %1739 = vmatpush1.bf16.msra.mxu1 %v2673_v50 }
 0x37e   :  { %v2581_v53 = vpop.f32.mrb[24].mxu1 }
 0x37f   :  { %v778_v54 = vadd.f32 %v2581_v53, %v3513_v60  ;;  %v769_v55 = vpop.f32.mrb[25].mxu1  ;;  %v2681_v53 = vld [vmem:[#allocation18 + $0x34] ss:$8 sps:$4 sm:$0xff]  }
 0x380   :  { %v770_v56 = vadd.f32 %v3513_v60, %v769_v55  ;;  %v2582_v57 = vpop.f32.mrb[26].mxu1  ;;  %1091 = vmatmul.mubr.bf16.gmra.mrb[52].mxu0 %v871_v51  ;;  %v2678_v51 = vld [vmem:[#allocation18 + $0x24] ss:$8 sps:$4 sm:$0xff]   ;;  %v3562_v55 = vshrl.u32 %v898_v52, 7 }
 0x381   :  { %v781_v58 = vadd.f32 %v2582_v57, %v3513_v60  ;;  %v772_v61 = vpop.f32.mrb[27].mxu1  ;;  %1100 = vmatprep.mubr.bf16.mxu0 %v3156_v43  ;;  %v850_v63 = vmax.f32 %v778_v54, 0.0  ;;  %1740 = vmatprep.subr.bf16.mxu1 %v2678_v51  ;;  %v2679_v54 = vld [vmem:[#allocation18 + $0x30] ss:$8 sps:$4 sm:$0xff]  }
 0x382   :  { %v773_v62 = vadd.f32 %v3513_v60, %v772_v61  ;;  %v848_v1 = vmax.f32 %v770_v56, 0.0  ;;  %v2682_v56 = vld [vmem:[#allocation18 + $0x40] ss:$8 sps:$4 sm:$0xff]   ;;  %v900_v57 = vsub.s32 0, %v3562_v55  ;;  %v896_v61 = vld [vmem:[#allocation15] sm:$0x3] }
 0x383   :  { %v851_v0 = vmax.f32 %v781_v58, 0.0  ;;  %v2687_v58 = vld [vmem:[#allocation18 + $0x54] ss:$8 sps:$4 sm:$0xff]  }
 0x384   :  { %v849_v59 = vmax.f32 %v773_v62, 0.0  ;;  %v904_v62 = vsub.s32 1, %v3562_v55 }
 0x385   :  { %v873_v2 = vpack.c.bf16 %v851_v0, %v850_v63  ;;  %v2685_v63 = vld [vmem:[#allocation18 + $0x50] ss:$8 sps:$4 sm:$0xff]   ;;  %v3568_v0 = vrot.slane %v896_v61, %v900_v57 }
 0x386   :  { %v872_v3 = vpack.c.bf16 %v849_v59, %v848_v1  ;;  %v2690_v1 = vld [vmem:[#allocation18 + $0x64] ss:$8 sps:$4 sm:$0xff]   ;;  %v3572_v59 = vrot.slane %v896_v61, %v904_v62 }
 0x388   :  { %1101 = vmatmul.mubr.bf16.gmra.mrb[56].mxu0 %v872_v3 }
 0x389   :  { %1110 = vmatprep.mubr.bf16.mxu0 %v3156_v43 }
 0x38e   :  { %v2585_v4 = vpop.f32.mrb[28].mxu1 }
 0x38f   :  { %v794_v5 = vadd.f32 %v2585_v4, %v3513_v60  ;;  %v785_v6 = vpop.f32.mrb[29].mxu1 }
 0x390   :  { %v786_v7 = vadd.f32 %v3513_v60, %v785_v6  ;;  %v2586_v8 = vpop.f32.mrb[30].mxu1  ;;  %1111 = vmatmul.mubr.bf16.gmra.mrb[60].mxu0 %v873_v2  ;;  %v2688_v2 = vld [vmem:[#allocation18 + $0x60] ss:$8 sps:$4 sm:$0xff]   ;;  %v2693_v6 = vld [vmem:[#allocation18 + $0x74] ss:$8 sps:$4 sm:$0xff]  }
 0x391   :  { %v797_v9 = vadd.f32 %v2586_v8, %v3513_v60  ;;  %v788_v10 = vpop.f32.mrb[31].mxu1  ;;  %1120 = vmatprep.mubr.bf16.mxu0 %v3156_v43  ;;  %v854_v12 = vmax.f32 %v794_v5, 0.0 }
 0x392   :  { %v789_v11 = vadd.f32 %v3513_v60, %v788_v10  ;;  %v852_v14 = vmax.f32 %v786_v7, 0.0 }
 0x393   :  { %v855_v13 = vmax.f32 %v797_v9, 0.0  ;;  %v2691_v9 = vld [vmem:[#allocation18 + $0x70] ss:$8 sps:$4 sm:$0xff]  }
 0x394   :  { %v853_v15 = vmax.f32 %v789_v11, 0.0 }
 0x395   :  { %v875_v16 = vpack.c.bf16 %v855_v13, %v854_v12 }
 0x396   :  { %v874_v17 = vpack.c.bf16 %v853_v15, %v852_v14  ;;  %v2696_v15 = vld [vmem:[#allocation18 + $0x84] ss:$8 sps:$4 sm:$0xff]  }
 0x398   :  { %1121 = vmatmul.mubr.bf16.gmra.mrb[64].mxu0 %v874_v17 }
 0x399   :  { %1130 = vmatprep.mubr.bf16.mxu0 %v3156_v43 }
 0x39e   :  { %v2589_v18 = vpop.f32.mrb[32].mxu1 }
 0x39f   :  { %v810_v19 = vadd.f32 %v2589_v18, %v3513_v60  ;;  %v801_v20 = vpop.f32.mrb[33].mxu1  ;;  %v2694_v18 = vld [vmem:[#allocation18 + $0x80] ss:$8 sps:$4 sm:$0xff]  }
 0x3a0   :  { %v802_v21 = vadd.f32 %v3513_v60, %v801_v20  ;;  %v2590_v22 = vpop.f32.mrb[34].mxu1  ;;  %1131 = vmatmul.mubr.bf16.gmra.mrb[68].mxu0 %v875_v16 }
 0x3a1   :  { %v813_v23 = vadd.f32 %v2590_v22, %v3513_v60  ;;  %v804_v24 = vpop.f32.mrb[35].mxu1  ;;  %1140 = vmatprep.mubr.bf16.mxu0 %v3156_v43  ;;  %v858_v26 = vmax.f32 %v810_v19, 0.0 }
 0x3a2   :  { %v805_v25 = vadd.f32 %v3513_v60, %v804_v24  ;;  %v856_v28 = vmax.f32 %v802_v21, 0.0 }
 0x3a3   :  { %v859_v27 = vmax.f32 %v813_v23, 0.0 }
 0x3a4   :  { %v857_v29 = vmax.f32 %v805_v25, 0.0 }
 0x3a5   :  { %v877_v30 = vpack.c.bf16 %v859_v27, %v858_v26  ;;  %v2699_v26 = vld [vmem:[#allocation18 + $0x94] ss:$8 sps:$4 sm:$0xff]  }
 0x3a6   :  { %v876_v31 = vpack.c.bf16 %v857_v29, %v856_v28  ;;  %v2697_v29 = vld [vmem:[#allocation18 + $0x90] ss:$8 sps:$4 sm:$0xff]  }
 0x3a8   :  { %1141 = vmatmul.mubr.bf16.gmra.mrb[72].mxu0 %v876_v31 }
 0x3a9   :  { %1150 = vmatprep.mubr.bf16.mxu0 %v3156_v43 }
 0x3ae   :  { %v2593_v32 = vpop.f32.mrb[36].mxu1 }
 0x3af   :  { %v826_v33 = vadd.f32 %v2593_v32, %v3513_v60  ;;  %v817_v34 = vpop.f32.mrb[37].mxu1 }
 0x3b0   :  { %v818_v35 = vadd.f32 %v3513_v60, %v817_v34  ;;  %v2594_v36 = vpop.f32.mrb[38].mxu1  ;;  %1151 = vmatmul.mubr.bf16.gmra.mrb[76].mxu0 %v877_v30 }
 0x3b1   :  { %v829_v37 = vadd.f32 %v2594_v36, %v3513_v60  ;;  %v820_v38 = vpop.f32.mrb[39].mxu1  ;;  %1160 = vmatprep.mubr.bf16.mxu0 %v3156_v43  ;;  %v862_v40 = vmax.f32 %v826_v33, 0.0 }
 0x3b2   :  { %v821_v39 = vadd.f32 %v3513_v60, %v820_v38  ;;  %v860_v42 = vmax.f32 %v818_v35, 0.0  ;;  %v2676_v60 = vld [vmem:[#allocation18 + $0x20] ss:$8 sps:$4 sm:$0xff]   ;;  %v3157_v35 = vmov 0.0  }
 0x3b3   :  { %v863_v41 = vmax.f32 %v829_v37, 0.0  ;;  %1741 = vmatpush1.bf16.msra.mxu1 %v2676_v60  ;;  %229 = vst [vmem:[#allocation2] sm:$0xf] %v3157_v35  ;;  %230 = vst [vmem:[#allocation3] sm:$0xf] %v3157_v35  ;;  %2595 = vmatprep.subr.bf16.mxu0 %v3157_v35 }
 0x3b4   :  { %v861_v44 = vmax.f32 %v821_v39, 0.0  ;;  %1742 = vmatprep.subr.bf16.mxu1 %v2681_v53  ;;  %v2702_v39 = vld [vmem:[#allocation18 + $0xa4] ss:$8 sps:$4 sm:$0xff]   ;;  %v2705_v60 = vld [vmem:[#allocation18 + $0xb4] ss:$8 sps:$4 sm:$0xff]  }
 0x3b5   :  { %v879_v45 = vpack.c.bf16 %v863_v41, %v862_v40 }
 0x3b6   :  { %v878_v46 = vpack.c.bf16 %v861_v44, %v860_v42  ;;  %v2700_v44 = vld [vmem:[#allocation18 + $0xa0] ss:$8 sps:$4 sm:$0xff]  }
 0x3b7   :  { %1743 = vmatpush1.bf16.msra.mxu1 %v2679_v54  ;;  %v2703_v54 = vld [vmem:[#allocation18 + $0xb0] ss:$8 sps:$4 sm:$0xff]  }
 0x3b8   :  { %1161 = vmatmul.mubr.bf16.gmra.mrb[80].mxu0 %v878_v46 }
 0x3b9   :  { %1170 = vmatprep.mubr.bf16.mxu0 %v3156_v43  ;;  %v2684_v43 = vld [vmem:[#allocation18 + $0x44] ss:$8 sps:$4 sm:$0xff]  }
 0x3ba   :  { %1744 = vmatprep.subr.bf16.mxu1 %v2684_v43 }
 0x3bb   :  { %1745 = vmatpush1.bf16.msra.mxu1 %v2682_v56 }
 0x3bc   :  { %1746 = vmatprep.subr.bf16.mxu1 %v2687_v58 }
 0x3bf   :  { %1747 = vmatpush1.bf16.msra.mxu1 %v2685_v63 }
 0x3c0   :  { %1171 = vmatmul.mubr.bf16.gmra.mrb[84].mxu0 %v879_v45  ;;  %1748 = vmatprep.subr.bf16.mxu1 %v2690_v1 }
 0x3c1   :  { %2611 = vmatprep.mubr.msk.bf16.mxu0 %vm3159_vm7, %v3157_v35 }
 0x3c3   :  { %1749 = vmatpush1.bf16.msra.mxu1 %v2688_v2 }
 0x3c4   :  { %1750 = vmatprep.subr.bf16.mxu1 %v2693_v6 }
 0x3c7   :  { %1751 = vmatpush1.bf16.msra.mxu1 %v2691_v9 }
 0x3c8   :  { %1752 = vmatprep.subr.bf16.mxu1 %v2696_v15 }
 0x3cb   :  { %1753 = vmatpush1.bf16.msra.mxu1 %v2694_v18 }
 0x3cc   :  { %1754 = vmatprep.subr.bf16.mxu1 %v2699_v26  ;;  %v2712_v26 = vld [vmem:[#allocation18 + $0xe0] ss:$8 sps:$4 sm:$0xff]  }
 0x3cf   :  { %1755 = vmatpush1.bf16.msra.mxu1 %v2697_v29 }
 0x3d0   :  { %1756 = vmatprep.subr.bf16.mxu1 %v2702_v39 }
 0x3d3   :  { %1757 = vmatpush1.bf16.msra.mxu1 %v2700_v44 }
 0x3d4   :  { %1758 = vmatprep.subr.bf16.mxu1 %v2705_v60 }
 0x3d7   :  { %1759 = vmatpush1.bf16.msra.mxu1 %v2703_v54 }
 0x41b   :  { %v1022_v3 = vpop.f32.mrb[24].mxu0 }
 0x41c   :  { %v1023_v4 = vadd.f32 %v1022_v3, %v3568_v0  ;;  %v1024_v5 = vpop.f32.mrb[25].mxu0 }
 0x41d   :  { %v1025_v7 = vadd.f32 %v1024_v5, %v3572_v59  ;;  %v1026_v8 = vpop.f32.mrb[26].mxu0 }
 0x41e   :  { %v1027_v10 = vadd.f32 %v1026_v8, %v3568_v0  ;;  %v1028_v11 = vpop.f32.mrb[27].mxu0  ;;  %v1181_v13 = vmax.f32 %v1023_v4, 0.0  ;;  %v2708_v4 = vld [vmem:[#allocation18 + $0xc4] ss:$8 sps:$4 sm:$0xff]   ;;  %v2706_v8 = vld [vmem:[#allocation18 + $0xc0] ss:$8 sps:$4 sm:$0xff]  }
 0x41f   :  { %v1029_v12 = vadd.f32 %v1028_v11, %v3572_v59  ;;  %v1182_v16 = vmax.f32 %v1025_v7, 0.0  ;;  %1760 = vmatprep.subr.bf16.mxu1 %v2708_v4 }
 0x420   :  { %v1183_v14 = vmax.f32 %v1027_v10, 0.0  ;;  %1761 = vmatpush1.bf16.msra.mxu1 %v2706_v8 }
 0x421   :  { %v1184_v17 = vmax.f32 %v1029_v12, 0.0 }
 0x422   :  { %v1246_v19 = vmax.f32 %v1181_v13, %v1183_v14  ;;  %v1367_v20 = vadd.f32 %v1183_v14, %v1181_v13 }
 0x423   :  { %v1267_v21 = vmax.f32 %v1182_v16, %v1184_v17  ;;  %v1388_v22 = vadd.f32 %v1184_v17, %v1182_v16  ;;  %v1032_v23 = vpop.f32.mrb[28].mxu0  ;;  %v2711_v16 = vld [vmem:[#allocation18 + $0xd4] ss:$8 sps:$4 sm:$0xff]  }
 0x424   :  { %v1033_v24 = vadd.f32 %v1032_v23, %v3568_v0  ;;  %v1034_v25 = vpop.f32.mrb[29].mxu0  ;;  %1762 = vmatprep.subr.bf16.mxu1 %v2711_v16  ;;  %v2714_v23 = vld [vmem:[#allocation18 + $0xe4] ss:$8 sps:$4 sm:$0xff]  }
 0x425   :  { %v1035_v27 = vadd.f32 %v1034_v25, %v3572_v59  ;;  %v1036_v28 = vpop.f32.mrb[30].mxu0 }
 0x426   :  { %v1185_v30 = vmax.f32 %v1033_v24, 0.0  ;;  %v1037_v31 = vadd.f32 %v1036_v28, %v3568_v0  ;;  %v1038_v32 = vpop.f32.mrb[31].mxu0 }
 0x427   :  { %v1186_v33 = vmax.f32 %v1035_v27, 0.0  ;;  %v1039_v34 = vadd.f32 %v1038_v32, %v3572_v59 }
 0x428   :  { %v1247_v36 = vmax.f32 %v1246_v19, %v1185_v30  ;;  %v1368_v37 = vadd.f32 %v1367_v20, %v1185_v30  ;;  %v1187_v38 = vmax.f32 %v1037_v31, 0.0  ;;  %v2709_v19 = vld [vmem:[#allocation18 + $0xd0] ss:$8 sps:$4 sm:$0xff]   ;;  %v2717_v30 = vld [vmem:[#allocation18 + $0xf4] ss:$8 sps:$4 sm:$0xff]  }
 0x429   :  { %v1268_v40 = vmax.f32 %v1267_v21, %v1186_v33  ;;  %v1389_v41 = vadd.f32 %v1388_v22, %v1186_v33  ;;  %v1188_v42 = vmax.f32 %v1039_v34, 0.0  ;;  %1763 = vmatpush1.bf16.msra.mxu1 %v2709_v19 }
 0x42a   :  { %v1248_v45 = vmax.f32 %v1247_v36, %v1187_v38  ;;  %v1369_v46 = vadd.f32 %v1368_v37, %v1187_v38  ;;  %1764 = vmatprep.subr.bf16.mxu1 %v2714_v23 }
 0x42b   :  { %v1269_v47 = vmax.f32 %v1268_v40, %v1188_v42  ;;  %v1390_v48 = vadd.f32 %v1389_v41, %v1188_v42  ;;  %v1042_v49 = vpop.f32.mrb[32].mxu0  ;;  %v2715_v40 = vld [vmem:[#allocation18 + $0xf0] ss:$8 sps:$4 sm:$0xff]  }
 0x42c   :  { %v1043_v50 = vadd.f32 %v1042_v49, %v3568_v0  ;;  %v1044_v51 = vpop.f32.mrb[33].mxu0 }
 0x42d   :  { %v1045_v52 = vadd.f32 %v1044_v51, %v3572_v59  ;;  %v1046_v53 = vpop.f32.mrb[34].mxu0  ;;  %1765 = vmatpush1.bf16.msra.mxu1 %v2712_v26 }
 0x42e   :  { %v1189_v43 = vmax.f32 %v1043_v50, 0.0  ;;  %v1047_v56 = vadd.f32 %v1046_v53, %v3568_v0  ;;  %v1048_v58 = vpop.f32.mrb[35].mxu0  ;;  %1766 = vmatprep.subr.bf16.mxu1 %v2717_v30  ;;  %v2720_v53 = vld [vmem:[#allocation16 + $0x4] ss:$8 sps:$4 sm:$0xff]  }
 0x42f   :  { %v1190_v61 = vmax.f32 %v1045_v52, 0.0  ;;  %v1049_v63 = vadd.f32 %v1048_v58, %v3572_v59 }
 0x430   :  { %v1249_v1 = vmax.f32 %v1248_v45, %v1189_v43  ;;  %v1370_v2 = vadd.f32 %v1369_v46, %v1189_v43  ;;  %v1191_v3 = vmax.f32 %v1047_v56, 0.0 }
 0x431   :  { %v1270_v5 = vmax.f32 %v1269_v47, %v1190_v61  ;;  %v1391_v6 = vadd.f32 %v1390_v48, %v1190_v61  ;;  %v1192_v7 = vmax.f32 %v1049_v63, 0.0  ;;  %1767 = vmatpush1.bf16.msra.mxu1 %v2715_v40 }
 0x432   :  { %v1250_v9 = vmax.f32 %v1249_v1, %v1191_v3  ;;  %v1371_v10 = vadd.f32 %v1370_v2, %v1191_v3  ;;  %1937 = vmatprep.subr.bf16.mxu1 %v2720_v53 }
 0x433   :  { %v1271_v11 = vmax.f32 %v1270_v5, %v1192_v7  ;;  %v1392_v12 = vadd.f32 %v1391_v6, %v1192_v7  ;;  %v1052_v13 = vpop.f32.mrb[36].mxu0 }
 0x434   :  { %v1053_v14 = vadd.f32 %v1052_v13, %v3568_v0  ;;  %v1054_v15 = vpop.f32.mrb[37].mxu0 }
 0x435   :  { %v1055_v17 = vadd.f32 %v1054_v15, %v3572_v59  ;;  %v1056_v18 = vpop.f32.mrb[38].mxu0 }
 0x436   :  { %v1193_v20 = vmax.f32 %v1053_v14, 0.0  ;;  %v1057_v21 = vadd.f32 %v1056_v18, %v3568_v0  ;;  %v1058_v22 = vpop.f32.mrb[39].mxu0 }
 0x437   :  { %v1194_v24 = vmax.f32 %v1055_v17, 0.0  ;;  %v1059_v25 = vadd.f32 %v1058_v22, %v3572_v59 }
 0x438   :  { %v1251_v27 = vmax.f32 %v1250_v9, %v1193_v20  ;;  %v1372_v28 = vadd.f32 %v1371_v10, %v1193_v20  ;;  %v1195_v29 = vmax.f32 %v1057_v21, 0.0 }
 0x439   :  { %v1272_v31 = vmax.f32 %v1271_v11, %v1194_v24  ;;  %v1393_v32 = vadd.f32 %v1392_v12, %v1194_v24  ;;  %v1196_v33 = vmax.f32 %v1059_v25, 0.0 }
 0x43a   :  { %v1252_v34 = vmax.f32 %v1251_v27, %v1195_v29  ;;  %v1373_v36 = vadd.f32 %v1372_v28, %v1195_v29 }
 0x43b   :  { %v1273_v37 = vmax.f32 %v1272_v31, %v1196_v33  ;;  %v1394_v38 = vadd.f32 %v1393_v32, %v1196_v33  ;;  %v1062_v39 = vpop.f32.mrb[40].mxu0 }
 0x43c   :  { %v1063_v41 = vadd.f32 %v1062_v39, %v3568_v0  ;;  %v1064_v42 = vpop.f32.mrb[41].mxu0 }
 0x43d   :  { %v1065_v44 = vadd.f32 %v1064_v42, %v3572_v59  ;;  %v1066_v45 = vpop.f32.mrb[42].mxu0 }
 0x43e   :  { %v1197_v46 = vmax.f32 %v1063_v41, 0.0  ;;  %v1067_v47 = vadd.f32 %v1066_v45, %v3568_v0  ;;  %v1068_v48 = vpop.f32.mrb[43].mxu0 }
 0x43f   :  { %v1198_v49 = vmax.f32 %v1065_v44, 0.0  ;;  %v1069_v50 = vadd.f32 %v1068_v48, %v3572_v59 }
 0x440   :  { %v1253_v51 = vmax.f32 %v1252_v34, %v1197_v46  ;;  %v1374_v60 = vadd.f32 %v1373_v36, %v1197_v46  ;;  %v1199_v52 = vmax.f32 %v1067_v47, 0.0 }
 0x441   :  { %v1274_v54 = vmax.f32 %v1273_v37, %v1198_v49  ;;  %v1395_v43 = vadd.f32 %v1394_v38, %v1198_v49  ;;  %v1200_v56 = vmax.f32 %v1069_v50, 0.0 }
 0x442   :  { %v1254_v58 = vmax.f32 %v1253_v51, %v1199_v52  ;;  %v1375_v61 = vadd.f32 %v1374_v60, %v1199_v52 }
 0x443   :  { %v1275_v63 = vmax.f32 %v1274_v54, %v1200_v56  ;;  %v1396_v1 = vadd.f32 %v1395_v43, %v1200_v56  ;;  %v1072_v2 = vpop.f32.mrb[44].mxu0 }
 0x444   :  { %v1073_v3 = vadd.f32 %v1072_v2, %v3568_v0  ;;  %v1074_v4 = vpop.f32.mrb[45].mxu0 }
 0x445   :  { %v1075_v5 = vadd.f32 %v1074_v4, %v3572_v59  ;;  %v1076_v6 = vpop.f32.mrb[46].mxu0 }
 0x446   :  { %v1201_v7 = vmax.f32 %v1073_v3, 0.0  ;;  %v1077_v8 = vadd.f32 %v1076_v6, %v3568_v0  ;;  %v1078_v9 = vpop.f32.mrb[47].mxu0 }
 0x447   :  { %v1202_v10 = vmax.f32 %v1075_v5, 0.0  ;;  %v1079_v11 = vadd.f32 %v1078_v9, %v3572_v59 }
 0x448   :  { %v1255_v12 = vmax.f32 %v1254_v58, %v1201_v7  ;;  %v1376_v13 = vadd.f32 %v1375_v61, %v1201_v7  ;;  %v1203_v14 = vmax.f32 %v1077_v8, 0.0 }
 0x449   :  { %v1276_v15 = vmax.f32 %v1275_v63, %v1202_v10  ;;  %v1397_v16 = vadd.f32 %v1396_v1, %v1202_v10  ;;  %v1204_v17 = vmax.f32 %v1079_v11, 0.0 }
 0x44a   :  { %v1256_v18 = vmax.f32 %v1255_v12, %v1203_v14  ;;  %v1377_v19 = vadd.f32 %v1376_v13, %v1203_v14 }
 0x44b   :  { %v1277_v20 = vmax.f32 %v1276_v15, %v1204_v17  ;;  %v1398_v21 = vadd.f32 %v1397_v16, %v1204_v17  ;;  %v1082_v22 = vpop.f32.mrb[48].mxu0 }
 0x44c   :  { %v1083_v23 = vadd.f32 %v1082_v22, %v3568_v0  ;;  %v1084_v24 = vpop.f32.mrb[49].mxu0 }
 0x44d   :  { %v1085_v25 = vadd.f32 %v1084_v24, %v3572_v59  ;;  %v1086_v26 = vpop.f32.mrb[50].mxu0 }
 0x44e   :  { %v1205_v27 = vmax.f32 %v1083_v23, 0.0  ;;  %v1087_v28 = vadd.f32 %v1086_v26, %v3568_v0  ;;  %v1088_v29 = vpop.f32.mrb[51].mxu0 }
 0x44f   :  { %v1206_v30 = vmax.f32 %v1085_v25, 0.0  ;;  %v1089_v31 = vadd.f32 %v1088_v29, %v3572_v59 }
 0x450   :  { %v1257_v32 = vmax.f32 %v1256_v18, %v1205_v27  ;;  %v1378_v33 = vadd.f32 %v1377_v19, %v1205_v27  ;;  %v1207_v34 = vmax.f32 %v1087_v28, 0.0 }
 0x451   :  { %v1278_v36 = vmax.f32 %v1277_v20, %v1206_v30  ;;  %v1399_v37 = vadd.f32 %v1398_v21, %v1206_v30  ;;  %v1208_v38 = vmax.f32 %v1089_v31, 0.0 }
 0x452   :  { %v1258_v39 = vmax.f32 %v1257_v32, %v1207_v34  ;;  %v1379_v40 = vadd.f32 %v1378_v33, %v1207_v34 }
 0x453   :  { %v1279_v41 = vmax.f32 %v1278_v36, %v1208_v38  ;;  %v1400_v42 = vadd.f32 %v1399_v37, %v1208_v38  ;;  %v1092_v44 = vpop.f32.mrb[52].mxu0 }
 0x454   :  { %v1093_v45 = vadd.f32 %v1092_v44, %v3568_v0  ;;  %v1094_v46 = vpop.f32.mrb[53].mxu0 }
 0x455   :  { %v1095_v47 = vadd.f32 %v1094_v46, %v3572_v59  ;;  %v1096_v48 = vpop.f32.mrb[54].mxu0 }
 0x456   :  { %v1209_v49 = vmax.f32 %v1093_v45, 0.0  ;;  %v1097_v50 = vadd.f32 %v1096_v48, %v3568_v0  ;;  %v1098_v51 = vpop.f32.mrb[55].mxu0 }
 0x457   :  { %v1210_v60 = vmax.f32 %v1095_v47, 0.0  ;;  %v1099_v52 = vadd.f32 %v1098_v51, %v3572_v59 }
 0x458   :  { %v1259_v53 = vmax.f32 %v1258_v39, %v1209_v49  ;;  %v1380_v54 = vadd.f32 %v1379_v40, %v1209_v49  ;;  %v1211_v43 = vmax.f32 %v1097_v50, 0.0 }
 0x459   :  { %v1280_v56 = vmax.f32 %v1279_v41, %v1210_v60  ;;  %v1401_v58 = vadd.f32 %v1400_v42, %v1210_v60  ;;  %v1212_v61 = vmax.f32 %v1099_v52, 0.0 }
 0x45a   :  { %v1260_v63 = vmax.f32 %v1259_v53, %v1211_v43  ;;  %v1381_v1 = vadd.f32 %v1380_v54, %v1211_v43 }
 0x45b   :  { %v1281_v2 = vmax.f32 %v1280_v56, %v1212_v61  ;;  %v1402_v3 = vadd.f32 %v1401_v58, %v1212_v61  ;;  %v1102_v4 = vpop.f32.mrb[56].mxu0 }
 0x45c   :  { %v1261_v5 = vrot.slane %v1260_v63, 4  ;;  %v1382_v6 = vrot.slane %v1381_v1, 4  ;;  %v1103_v7 = vadd.f32 %v1102_v4, %v3568_v0  ;;  %v1104_v8 = vpop.f32.mrb[57].mxu0 }
 0x45d   :  { %v1282_v9 = vrot.slane %v1281_v2, 4  ;;  %v1403_v10 = vrot.slane %v1402_v3, 4  ;;  %v1105_v11 = vadd.f32 %v1104_v8, %v3572_v59  ;;  %v1106_v12 = vpop.f32.mrb[58].mxu0 }
 0x45e   :  { %v1262_v13 = vmax.f32 %v1260_v63, %v1261_v5  ;;  %v1383_v14 = vadd.f32 %v1382_v6, %v1381_v1  ;;  %v1107_v15 = vadd.f32 %v1106_v12, %v3568_v0  ;;  %v1108_v16 = vpop.f32.mrb[59].mxu0  ;;  %v1213_v22 = vmax.f32 %v1103_v7, 0.0 }
 0x45f   :  { %v1283_v17 = vmax.f32 %v1281_v2, %v1282_v9  ;;  %v1404_v18 = vadd.f32 %v1403_v10, %v1402_v3  ;;  %v1109_v19 = vadd.f32 %v1108_v16, %v3572_v59  ;;  %v1214_v26 = vmax.f32 %v1105_v11, 0.0 }
 0x460   :  { %v1263_v20 = vrot.slane %v1262_v13, 2  ;;  %v1384_v21 = vrot.slane %v1383_v14, 2  ;;  %v1215_v23 = vmax.f32 %v1107_v15, 0.0 }
 0x461   :  { %v1284_v24 = vrot.slane %v1283_v17, 2  ;;  %v1405_v25 = vrot.slane %v1404_v18, 2  ;;  %v1216_v27 = vmax.f32 %v1109_v19, 0.0 }
 0x462   :  { %v1264_v28 = vmax.f32 %v1262_v13, %v1263_v20  ;;  %v1385_v29 = vadd.f32 %v1384_v21, %v1383_v14  ;;  %v1288_v30 = vmax.f32 %v1213_v22, %v1215_v23  ;;  %v1409_v31 = vadd.f32 %v1215_v23, %v1213_v22 }
 0x463   :  { %v1285_v32 = vmax.f32 %v1283_v17, %v1284_v24  ;;  %v1406_v33 = vadd.f32 %v1405_v25, %v1404_v18  ;;  %v1309_v34 = vmax.f32 %v1214_v26, %v1216_v27  ;;  %v1430_v36 = vadd.f32 %v1216_v27, %v1214_v26  ;;  %v1112_v37 = vpop.f32.mrb[60].mxu0 }
 0x464   :  { %v1265_v38 = vrot.slane %v1264_v28, 1  ;;  %v1386_v39 = vrot.slane %v1385_v29, 1  ;;  %v1113_v40 = vadd.f32 %v1112_v37, %v3568_v0  ;;  %v1114_v41 = vpop.f32.mrb[61].mxu0 }
 0x465   :  { %v1286_v42 = vrot.slane %v1285_v32, 1  ;;  %v1407_v44 = vrot.slane %v1406_v33, 1  ;;  %v1115_v45 = vadd.f32 %v1114_v41, %v3572_v59  ;;  %v1116_v46 = vpop.f32.mrb[62].mxu0 }
 0x466   :  { %v3615_v47 = vmax.f32 %v1264_v28, %v1265_v38  ;;  %v3617_v48 = vadd.f32 %v1386_v39, %v1385_v29  ;;  %v1217_v49 = vmax.f32 %v1113_v40, 0.0  ;;  %v1117_v50 = vadd.f32 %v1116_v46, %v3568_v0  ;;  %v1118_v51 = vpop.f32.mrb[63].mxu0 }
 0x467   :  { %v3620_v60 = vmax.f32 %v1285_v32, %v1286_v42  ;;  %v3622_v52 = vadd.f32 %v1407_v44, %v1406_v33  ;;  %v1218_v53 = vmax.f32 %v1115_v45, 0.0  ;;  %v1119_v54 = vadd.f32 %v1118_v51, %v3572_v59 }
 0x468   :  { %v1289_v43 = vmax.f32 %v1288_v30, %v1217_v49  ;;  %v1410_v56 = vadd.f32 %v1409_v31, %v1217_v49  ;;  %v1219_v58 = vmax.f32 %v1117_v50, 0.0 }
 0x469   :  { %v1334_v61 = vcombine.low %v3615_v47, %v3620_v60  ;;  %v1455_v63 = vcombine.low %v3617_v48, %v3622_v52  ;;  %v1310_v1 = vmax.f32 %v1309_v34, %v1218_v53  ;;  %v1431_v2 = vadd.f32 %v1430_v36, %v1218_v53 }
 0x46a   :  { %v1290_v3 = vmax.f32 %v1289_v43, %v1219_v58  ;;  %v1411_v4 = vadd.f32 %v1410_v56, %v1219_v58  ;;  %v1220_v5 = vmax.f32 %v1119_v54, 0.0 }
 0x46b   :  { %v1122_v6 = vpop.f32.mrb[64].mxu0 }
 0x46c   :  { %v1311_v7 = vmax.f32 %v1310_v1, %v1220_v5  ;;  %v1432_v8 = vadd.f32 %v1431_v2, %v1220_v5  ;;  %v1123_v9 = vadd.f32 %v1122_v6, %v3568_v0  ;;  %v1124_v10 = vpop.f32.mrb[65].mxu0 }
 0x46d   :  { %v1125_v11 = vadd.f32 %v1124_v10, %v3572_v59  ;;  %v1126_v12 = vpop.f32.mrb[66].mxu0 }
 0x46e   :  { %v1221_v13 = vmax.f32 %v1123_v9, 0.0  ;;  %v1127_v14 = vadd.f32 %v1126_v12, %v3568_v0  ;;  %v1128_v15 = vpop.f32.mrb[67].mxu0 }
 0x46f   :  { %v1222_v16 = vmax.f32 %v1125_v11, 0.0  ;;  %v1129_v17 = vadd.f32 %v1128_v15, %v3572_v59 }
 0x470   :  { %v1291_v18 = vmax.f32 %v1290_v3, %v1221_v13  ;;  %v1412_v19 = vadd.f32 %v1411_v4, %v1221_v13  ;;  %v1223_v20 = vmax.f32 %v1127_v14, 0.0 }
 0x471   :  { %v1312_v21 = vmax.f32 %v1311_v7, %v1222_v16  ;;  %v1433_v22 = vadd.f32 %v1432_v8, %v1222_v16  ;;  %v1224_v23 = vmax.f32 %v1129_v17, 0.0 }
 0x472   :  { %v1292_v24 = vmax.f32 %v1291_v18, %v1223_v20  ;;  %v1413_v25 = vadd.f32 %v1412_v19, %v1223_v20 }
 0x473   :  { %v1313_v26 = vmax.f32 %v1312_v21, %v1224_v23  ;;  %v1434_v27 = vadd.f32 %v1433_v22, %v1224_v23  ;;  %v1132_v28 = vpop.f32.mrb[68].mxu0 }
 0x474   :  { %v1133_v29 = vadd.f32 %v1132_v28, %v3568_v0  ;;  %v1134_v30 = vpop.f32.mrb[69].mxu0 }
 0x475   :  { %v1135_v31 = vadd.f32 %v1134_v30, %v3572_v59  ;;  %v1136_v32 = vpop.f32.mrb[70].mxu0 }
 0x476   :  { %v1225_v33 = vmax.f32 %v1133_v29, 0.0  ;;  %v1137_v34 = vadd.f32 %v1136_v32, %v3568_v0  ;;  %v1138_v36 = vpop.f32.mrb[71].mxu0 }
 0x477   :  { %v1226_v37 = vmax.f32 %v1135_v31, 0.0  ;;  %v1139_v38 = vadd.f32 %v1138_v36, %v3572_v59 }
 0x478   :  { %v1293_v39 = vmax.f32 %v1292_v24, %v1225_v33  ;;  %v1414_v40 = vadd.f32 %v1413_v25, %v1225_v33  ;;  %v1227_v41 = vmax.f32 %v1137_v34, 0.0 }
 0x479   :  { %v1314_v42 = vmax.f32 %v1313_v26, %v1226_v37  ;;  %v1435_v44 = vadd.f32 %v1434_v27, %v1226_v37  ;;  %v1228_v45 = vmax.f32 %v1139_v38, 0.0 }
 0x47a   :  { %v1294_v46 = vmax.f32 %v1293_v39, %v1227_v41  ;;  %v1415_v49 = vadd.f32 %v1414_v40, %v1227_v41 }
 0x47b   :  { %v1315_v50 = vmax.f32 %v1314_v42, %v1228_v45  ;;  %v1436_v51 = vadd.f32 %v1435_v44, %v1228_v45  ;;  %v1142_v53 = vpop.f32.mrb[72].mxu0 }
 0x47c   :  { %v1143_v54 = vadd.f32 %v1142_v53, %v3568_v0  ;;  %v1144_v43 = vpop.f32.mrb[73].mxu0 }
 0x47d   :  { %v1145_v56 = vadd.f32 %v1144_v43, %v3572_v59  ;;  %v1146_v58 = vpop.f32.mrb[74].mxu0 }
 0x47e   :  { %v1229_v1 = vmax.f32 %v1143_v54, 0.0  ;;  %v1147_v2 = vadd.f32 %v1146_v58, %v3568_v0  ;;  %v1148_v3 = vpop.f32.mrb[75].mxu0 }
 0x47f   :  { %v1230_v4 = vmax.f32 %v1145_v56, 0.0  ;;  %v1149_v5 = vadd.f32 %v1148_v3, %v3572_v59 }
 0x480   :  { %v1295_v6 = vmax.f32 %v1294_v46, %v1229_v1  ;;  %v1416_v7 = vadd.f32 %v1415_v49, %v1229_v1  ;;  %v1231_v8 = vmax.f32 %v1147_v2, 0.0 }
 0x481   :  { %v1316_v9 = vmax.f32 %v1315_v50, %v1230_v4  ;;  %v1437_v10 = vadd.f32 %v1436_v51, %v1230_v4  ;;  %v1232_v11 = vmax.f32 %v1149_v5, 0.0 }
 0x482   :  { %v1296_v12 = vmax.f32 %v1295_v6, %v1231_v8  ;;  %v1417_v13 = vadd.f32 %v1416_v7, %v1231_v8 }
 0x483   :  { %v1317_v14 = vmax.f32 %v1316_v9, %v1232_v11  ;;  %v1438_v15 = vadd.f32 %v1437_v10, %v1232_v11  ;;  %v1152_v16 = vpop.f32.mrb[76].mxu0 }
 0x484   :  { %v1153_v17 = vadd.f32 %v1152_v16, %v3568_v0  ;;  %v1154_v18 = vpop.f32.mrb[77].mxu0 }
 0x485   :  { %v1155_v19 = vadd.f32 %v1154_v18, %v3572_v59  ;;  %v1156_v20 = vpop.f32.mrb[78].mxu0 }
 0x486   :  { %v1233_v21 = vmax.f32 %v1153_v17, 0.0  ;;  %v1157_v22 = vadd.f32 %v1156_v20, %v3568_v0  ;;  %v1158_v23 = vpop.f32.mrb[79].mxu0 }
 0x487   :  { %v1234_v24 = vmax.f32 %v1155_v19, 0.0  ;;  %v1159_v25 = vadd.f32 %v1158_v23, %v3572_v59 }
 0x488   :  { %v1297_v26 = vmax.f32 %v1296_v12, %v1233_v21  ;;  %v1418_v27 = vadd.f32 %v1417_v13, %v1233_v21  ;;  %v1235_v28 = vmax.f32 %v1157_v22, 0.0 }
 0x489   :  { %v1318_v29 = vmax.f32 %v1317_v14, %v1234_v24  ;;  %v1439_v30 = vadd.f32 %v1438_v15, %v1234_v24  ;;  %v1236_v31 = vmax.f32 %v1159_v25, 0.0 }
 0x48a   :  { %v1298_v32 = vmax.f32 %v1297_v26, %v1235_v28  ;;  %v1419_v33 = vadd.f32 %v1418_v27, %v1235_v28 }
 0x48b   :  { %v1319_v34 = vmax.f32 %v1318_v29, %v1236_v31  ;;  %v1440_v36 = vadd.f32 %v1439_v30, %v1236_v31  ;;  %v1162_v37 = vpop.f32.mrb[80].mxu0 }
 0x48c   :  { %v1163_v38 = vadd.f32 %v1162_v37, %v3568_v0  ;;  %v1164_v39 = vpop.f32.mrb[81].mxu0 }
 0x48d   :  { %v1165_v40 = vadd.f32 %v1164_v39, %v3572_v59  ;;  %v1166_v41 = vpop.f32.mrb[82].mxu0 }
 0x48e   :  { %v1237_v42 = vmax.f32 %v1163_v38, 0.0  ;;  %v1167_v44 = vadd.f32 %v1166_v41, %v3568_v0  ;;  %v1168_v45 = vpop.f32.mrb[83].mxu0 }
 0x48f   :  { %v1238_v46 = vmax.f32 %v1165_v40, 0.0  ;;  %v1169_v49 = vadd.f32 %v1168_v45, %v3572_v59 }
 0x490   :  { %v1299_v50 = vmax.f32 %v1298_v32, %v1237_v42  ;;  %v1420_v51 = vadd.f32 %v1419_v33, %v1237_v42  ;;  %v1239_v53 = vmax.f32 %v1167_v44, 0.0  ;;  %v3158_v32 = vmov 1983009808  }
 0x491   :  { %v1320_v54 = vmax.f32 %v1319_v34, %v1238_v46  ;;  %v1441_v43 = vadd.f32 %v1440_v36, %v1238_v46  ;;  %v1240_v56 = vmax.f32 %v1169_v49, 0.0  ;;  %v1336_v33 = vunpack.c.l.s4 %v3158_v32  ;;  %v2744_v32 = vld [vmem:[#allocation16 + $0x84] ss:$8 sps:$4 sm:$0xff]  }
 0x492   :  { %v1300_v58 = vmax.f32 %v1299_v50, %v1239_v53  ;;  %v1421_v1 = vadd.f32 %v1420_v51, %v1239_v53 }
 0x493   :  { %v1321_v2 = vmax.f32 %v1320_v54, %v1240_v56  ;;  %v1442_v3 = vadd.f32 %v1441_v43, %v1240_v56  ;;  %v1172_v4 = vpop.f32.mrb[84].mxu0  ;;  %v1337_v44 = vunpack.c.0.s8 %v1336_v33  ;;  %v2742_v33 = vld [vmem:[#allocation16 + $0x80] ss:$8 sps:$4 sm:$0xff]  }
 0x494   :  { %v1173_v5 = vadd.f32 %v1172_v4, %v3568_v0  ;;  %v1174_v6 = vpop.f32.mrb[85].mxu0 }
 0x495   :  { %v1175_v7 = vadd.f32 %v1174_v6, %v3572_v59  ;;  %v1176_v8 = vpop.f32.mrb[86].mxu0  ;;  %v1340_v54 = vsub.s32 %v1337_v44, %v3562_v55  ;;  %v2759_v44 = vld [vmem:[#allocation16 + $0xd4] ss:$8 sps:$4 sm:$0xff]  }
 0x496   :  { %v1241_v9 = vmax.f32 %v1173_v5, 0.0  ;;  %v1177_v10 = vadd.f32 %v1176_v8, %v3568_v0  ;;  %v1178_v11 = vpop.f32.mrb[87].mxu0  ;;  %v1245_v8 = vld [vmem:[#allocation2] sm:$0xf] }
 0x497   :  { %v1242_v12 = vmax.f32 %v1175_v7, 0.0  ;;  %v1179_v13 = vadd.f32 %v1178_v11, %v3572_v59 }
 0x498   :  { %v1301_v14 = vmax.f32 %v1300_v58, %v1241_v9  ;;  %v1422_v15 = vadd.f32 %v1421_v1, %v1241_v9  ;;  %v1243_v16 = vmax.f32 %v1177_v10, 0.0  ;;  %v1366_v10 = vld [vmem:[#allocation3] sm:$0xf] }
 0x499   :  { %v1322_v17 = vmax.f32 %v1321_v2, %v1242_v12  ;;  %v1443_v18 = vadd.f32 %v1442_v3, %v1242_v12  ;;  %v1244_v19 = vmax.f32 %v1179_v13, 0.0  ;;  %v1341_v2 = vrot.slane %v1334_v61, %v1340_v54 }
 0x49a   :  { %v1302_v20 = vmax.f32 %v1301_v14, %v1243_v16  ;;  %v1423_v21 = vadd.f32 %v1422_v15, %v1243_v16  ;;  %v1462_v3 = vrot.slane %v1455_v63, %v1340_v54 }
 0x49b   :  { %v1323_v22 = vmax.f32 %v1322_v17, %v1244_v19  ;;  %v1444_v23 = vadd.f32 %v1443_v18, %v1244_v19  ;;  %v2718_v17 = vld [vmem:[#allocation16] ss:$8 sps:$4 sm:$0xff]   ;;  %v2723_v19 = vld [vmem:[#allocation16 + $0x14] ss:$8 sps:$4 sm:$0xff]  }
 0x49c   :  { %v1303_v24 = vrot.slane %v1302_v20, 4  ;;  %v1424_v25 = vrot.slane %v1423_v21, 4 }
 0x49d   :  { %v1324_v26 = vrot.slane %v1323_v22, 4  ;;  %v1445_v27 = vrot.slane %v1444_v23, 4 }
 0x49e   :  { %v1304_v28 = vmax.f32 %v1302_v20, %v1303_v24  ;;  %v1425_v0 = vadd.f32 %v1424_v25, %v1423_v21  ;;  %v2721_v21 = vld [vmem:[#allocation16 + $0x10] ss:$8 sps:$4 sm:$0xff]   ;;  %v2729_v24 = vld [vmem:[#allocation16 + $0x34] ss:$8 sps:$4 sm:$0xff]  }
 0x49f   :  { %v1325_v29 = vmax.f32 %v1323_v22, %v1324_v26  ;;  %v1446_v30 = vadd.f32 %v1445_v27, %v1444_v23  ;;  %v2726_v22 = vld [vmem:[#allocation16 + $0x24] ss:$8 sps:$4 sm:$0xff]   ;;  %v2724_v23 = vld [vmem:[#allocation16 + $0x20] ss:$8 sps:$4 sm:$0xff]   ;;  %v2727_v25 = vld [vmem:[#allocation16 + $0x30] ss:$8 sps:$4 sm:$0xff]  }
 0x4a0   :  { %v1305_v31 = vrot.slane %v1304_v28, 2  ;;  %v1426_v59 = vrot.slane %v1425_v0, 2  ;;  %v2732_v26 = vld [vmem:[#allocation16 + $0x44] ss:$8 sps:$4 sm:$0xff]   ;;  %v2730_v27 = vld [vmem:[#allocation16 + $0x40] ss:$8 sps:$4 sm:$0xff]  }
 0x4a1   :  { %v1326_v34 = vrot.slane %v1325_v29, 2  ;;  %v1447_v36 = vrot.slane %v1446_v30, 2 }
 0x4a2   :  { %v1306_v37 = vmax.f32 %v1304_v28, %v1305_v31  ;;  %v1427_v38 = vadd.f32 %v1426_v59, %v1425_v0  ;;  %v2735_v28 = vld [vmem:[#allocation16 + $0x54] ss:$8 sps:$4 sm:$0xff]   ;;  %v2733_v0 = vld [vmem:[#allocation16 + $0x50] ss:$8 sps:$4 sm:$0xff]  }
 0x4a3   :  { %v1327_v39 = vmax.f32 %v1325_v29, %v1326_v34  ;;  %v1448_v40 = vadd.f32 %v1447_v36, %v1446_v30  ;;  %v2738_v29 = vld [vmem:[#allocation16 + $0x64] ss:$8 sps:$4 sm:$0xff]   ;;  %v2736_v30 = vld [vmem:[#allocation16 + $0x60] ss:$8 sps:$4 sm:$0xff]   ;;  %v2741_v31 = vld [vmem:[#allocation16 + $0x74] ss:$8 sps:$4 sm:$0xff]  }
 0x4a4   :  { %v1307_v41 = vrot.slane %v1306_v37, 1  ;;  %v1428_v42 = vrot.slane %v1427_v38, 1  ;;  %v2739_v59 = vld [vmem:[#allocation16 + $0x70] ss:$8 sps:$4 sm:$0xff]   ;;  %v2747_v34 = vld [vmem:[#allocation16 + $0x94] ss:$8 sps:$4 sm:$0xff]  }
 0x4a5   :  { %v1328_v45 = vrot.slane %v1327_v39, 1  ;;  %v1449_v46 = vrot.slane %v1448_v40, 1  ;;  %v2745_v36 = vld [vmem:[#allocation16 + $0x90] ss:$8 sps:$4 sm:$0xff]  }
 0x4a6   :  { %v1308_v49 = vmax.f32 %v1306_v37, %v1307_v41  ;;  %v1429_v50 = vadd.f32 %v1428_v42, %v1427_v38  ;;  %v2750_v37 = vld [vmem:[#allocation16 + $0xa4] ss:$8 sps:$4 sm:$0xff]   ;;  %v2748_v38 = vld [vmem:[#allocation16 + $0xa0] ss:$8 sps:$4 sm:$0xff]  }
 0x4a7   :  { %v1329_v51 = vmax.f32 %v1327_v39, %v1328_v45  ;;  %v1450_v53 = vadd.f32 %v1449_v46, %v1448_v40  ;;  %v2753_v39 = vld [vmem:[#allocation16 + $0xb4] ss:$8 sps:$4 sm:$0xff]   ;;  %v2751_v40 = vld [vmem:[#allocation16 + $0xb0] ss:$8 sps:$4 sm:$0xff]   ;;  %v2756_v41 = vld [vmem:[#allocation16 + $0xc4] ss:$8 sps:$4 sm:$0xff]  }
 0x4a8   :  { %v2754_v42 = vld [vmem:[#allocation16 + $0xc0] ss:$8 sps:$4 sm:$0xff]   ;;  %v2757_v45 = vld [vmem:[#allocation16 + $0xd0] ss:$8 sps:$4 sm:$0xff]   ;;  %v2762_v46 = vld [vmem:[#allocation16 + $0xe4] ss:$8 sps:$4 sm:$0xff]  }
 0x4a9   :  { %v1342_v43 = vcombine.low %v1308_v49, %v1329_v51  ;;  %v1463_v56 = vcombine.low %v1429_v50, %v1450_v53  ;;  %v2760_v49 = vld [vmem:[#allocation16 + $0xe0] ss:$8 sps:$4 sm:$0xff]   ;;  %v2765_v50 = vld [vmem:[#allocation16 + $0xf4] ss:$8 sps:$4 sm:$0xff]   ;;  %v2763_v51 = vld [vmem:[#allocation16 + $0xf0] ss:$8 sps:$4 sm:$0xff]  }
 0x4ab   :  { %v1349_v58 = vrot.slane %v1342_v43, %v1340_v54  ;;  %v1470_v1 = vrot.slane %v1463_v56, %v1340_v54  ;;  %v2766_v54 = vld [vmem:[#allocation21 + $0x40] sm:$0xff]   ;;  %v2768_v56 = vld [vmem:[#allocation21 + $0x48] sm:$0xff]  }
 0x4ac   :  { %v2767_v43 = vld [vmem:[#allocation21] sm:$0xff]  }
 0x4ad   :  { %v1354_v4 = vrot.slane %v1349_v58, 7  ;;  %v1473_v5 = vrot.slane %v1470_v1, 7  ;;  %v2769_v58 = vld [vmem:[#allocation21 + $0x8] sm:$0xff]   ;;  %v2770_v1 = vld [vmem:[#allocation21 + $0x50] sm:$0xff]  }
 0x4af   :  { %v1356_v6 = vsel %vm1355_vm3, %v1354_v4, %v1341_v2  ;;  %v1474_v7 = vsel %vm1355_vm3, %v1473_v5, %v1462_v3  ;;  %v2771_v2 = vld [vmem:[#allocation21 + $0x10] sm:$0xff]   ;;  %v2772_v3 = vld [vmem:[#allocation21 + $0x58] sm:$0xff]  }
 0x4b0   :  { %v1358_v9 = vsel %vm1357_vm4, %v1354_v4, %v1356_v6  ;;  %v1475_v11 = vsel %vm1357_vm4, %v1473_v5, %v1474_v7  ;;  %v2775_v6 = vld [vmem:[#allocation21 + $0x20] sm:$0xff]   ;;  %v2776_v7 = vld [vmem:[#allocation21 + $0x68] sm:$0xff]  }
 0x4b1   :  { %v1360_v12 = vsel %vm1359_vm5, %v1354_v4, %v1358_v9  ;;  %v1476_v13 = vsel %vm1359_vm5, %v1473_v5, %v1475_v11  ;;  %v2778_v9 = vld [vmem:[#allocation21 + $0x70] sm:$0xff]   ;;  %v2780_v11 = vld [vmem:[#allocation21 + $0x78] sm:$0xff]  }
 0x4b2   :  { %v1362_v14 = vsel %vm1361_vm6, %v1354_v4, %v1360_v12  ;;  %v1477_v15 = vsel %vm1361_vm6, %v1473_v5, %v1476_v13  ;;  %v2773_v4 = vld [vmem:[#allocation21 + $0x18] sm:$0xff]   ;;  %v2774_v5 = vld [vmem:[#allocation21 + $0x60] sm:$0xff]  }
 0x4b3   :  { %v1364_v47 = vmax.f32 %v1245_v8, %v1362_v14  ;;  %v1479_v60 = vadd.f32 %v1477_v15, %v1366_v10  ;;  %v2777_v8 = vld [vmem:[#allocation21 + $0x28] sm:$0xff]   ;;  %v2779_v10 = vld [vmem:[#allocation21 + $0x30] sm:$0xff]   ;;  %v2781_v12 = vld [vmem:[#allocation21 + $0x38] sm:$0xff]  }
 0x4b4   :  { %v2782_v13 = vld [vmem:[#allocation24] sm:$0xff]   ;;  %v2783_v14 = vld [vmem:[#allocation24 + $0x8] sm:$0xff]   ;;  %v2784_v15 = vld [vmem:[#allocation24 + $0x10] sm:$0xff]  }
 0x4b5   :  { %1365 = vst [vmem:[#allocation2] sm:$0xf] %v1364_v47  ;;  %1480 = vst [vmem:[#allocation3] sm:$0xf] %v1479_v60  ;;  %2596 = vmatpush3.bf16.msra.mxu0 %v2782_v13  ;;  %v2785_v47 = vld [vmem:[#allocation24 + $0x18] sm:$0xff]   ;;  %v2786_v60 = vld [vmem:[#allocation24 + $0x20] sm:$0xff]  }
 0x4b6   :  { %2597 = vmatprep.subr.bf16.mxu0 %v3157_v35 }
 0x4b9   :  { %2598 = vmatpush3.bf16.msra.mxu0 %v2783_v14 }
 0x4ba   :  { %2599 = vmatprep.subr.bf16.mxu0 %v3157_v35 }
 0x4bc   :  { %v2362_v48 = vld.sshfl [vmem:[#allocation3] sm:$0x33 pattern:$0x76325410] }
 0x4bd   :  { %v1539_v52 = vcombine.high %v2362_v48, %v2362_v48  ;;  %v3660_v61 = vld.sshfl [vmem:[#allocation2] sm:$0x33 pattern:$0x76325410]  ;;  %v1542_v18 = vpack.c.bf16 %v2362_v48, %v2362_v48  ;;  %2600 = vmatpush3.bf16.msra.mxu0 %v2784_v15  ;;  %v2787_v48 = vld [vmem:[#allocation24 + $0x28] sm:$0xff]  }
 0x4be   :  { %v1494_v63 = vcombine.high %v3660_v61, %v3660_v61  ;;  %v1497_v53 = vpack.c.bf16 %v3660_v61, %v3660_v61  ;;  %2601 = vmatprep.subr.bf16.mxu0 %v3157_v35  ;;  %v2789_v61 = vld [vmem:[#allocation24 + $0x38] sm:$0xff]  }
 0x4bf   :  { %v1543_v16 = vpack.c.bf16 %v1539_v52, %v1539_v52  ;;  %v2788_v52 = vld [vmem:[#allocation24 + $0x30] sm:$0xff]  }
 0x4c0   :  { %v1498_v20 = vpack.c.bf16 %v1494_v63, %v1494_v63 }
 0x4c1   :  { %1768 = vmatprep.mubr.bf16.mxu1 %v1543_v16  ;;  %2602 = vmatpush3.bf16.msra.mxu0 %v2785_v47 }
 0x4c2   :  { %1769 = vmatmul.mubr.bf16.vlgmr.msra.gmra.mrb[40].mxu1 %v1542_v18  ;;  %2603 = vmatprep.subr.bf16.mxu0 %v3157_v35 }
 0x4c3   :  { %1938 = vmatpush1.bf16.msra.mxu1 %v2718_v17  ;;  %1969 = vmatprep.mubr.bf16.mxu1 %v1498_v20 }
 0x4c4   :  { %1939 = vmatprep.subr.bf16.mxu1 %v2723_v19  ;;  %v1978_v19 = vld [vmem:[#allocation19] sm:$0x3] }
 0x4c5   :  { %2604 = vmatpush3.bf16.msra.mxu0 %v2786_v60  ;;  %v1983_v20 = vrot.slane %v1978_v19, %v900_v57 }
 0x4c6   :  { %2605 = vmatprep.subr.bf16.mxu0 %v3157_v35 }
 0x4c7   :  { %1940 = vmatpush1.bf16.msra.mxu1 %v2721_v21 }
 0x4c8   :  { %1941 = vmatprep.subr.bf16.mxu1 %v2726_v22  ;;  %v1987_v22 = vrot.slane %v1978_v19, %v904_v62 }
 0x4c9   :  { %2606 = vmatpush3.bf16.msra.mxu0 %v2787_v48 }
 0x4ca   :  { %2607 = vmatprep.subr.bf16.mxu0 %v3157_v35 }
 0x4cb   :  { %1942 = vmatpush1.bf16.msra.mxu1 %v2724_v23 }
 0x4cc   :  { %1943 = vmatprep.subr.bf16.mxu1 %v2729_v24 }
 0x4cd   :  { %2608 = vmatpush3.bf16.msra.mxu0 %v2788_v52 }
 0x4ce   :  { %2609 = vmatprep.subr.bf16.mxu0 %v3157_v35 }
 0x4cf   :  { %1944 = vmatpush1.bf16.msra.mxu1 %v2727_v25 }
 0x4d0   :  { %1945 = vmatprep.subr.bf16.mxu1 %v2732_v26 }
 0x4d1   :  { %2610 = vmatpush3.bf16.msra.mxu0 %v2789_v61 }
 0x4d3   :  { %1946 = vmatpush1.bf16.msra.mxu1 %v2730_v27 }
 0x4d4   :  { %1947 = vmatprep.subr.bf16.mxu1 %v2735_v28 }
 0x4d7   :  { %1948 = vmatpush1.bf16.msra.mxu1 %v2733_v0 }
 0x4d8   :  { %1949 = vmatprep.subr.bf16.mxu1 %v2738_v29 }
 0x4db   :  { %1950 = vmatpush1.bf16.msra.mxu1 %v2736_v30 }
 0x4dc   :  { %1951 = vmatprep.subr.bf16.mxu1 %v2741_v31 }
 0x4df   :  { %1952 = vmatpush1.bf16.msra.mxu1 %v2739_v59 }
 0x4e0   :  { %1953 = vmatprep.subr.bf16.mxu1 %v2744_v32  ;;  %v2427_v32 = vld [vmem:[#allocation22] ss:$0 sm:$0xff] }
 0x4e3   :  { %1954 = vmatpush1.bf16.msra.mxu1 %v2742_v33 }
 0x4e4   :  { %1955 = vmatprep.subr.bf16.mxu1 %v2747_v34 }
 0x4e7   :  { %1956 = vmatpush1.bf16.msra.mxu1 %v2745_v36 }
 0x4e8   :  { %1957 = vmatprep.subr.bf16.mxu1 %v2750_v37 }
 0x4eb   :  { %1958 = vmatpush1.bf16.msra.mxu1 %v2748_v38 }
 0x4ec   :  { %1959 = vmatprep.subr.bf16.mxu1 %v2753_v39  ;;  %v2444_v39 = vld [vmem:[#allocation25] ss:$0 sm:$0xff] }
 0x4ef   :  { %1960 = vmatpush1.bf16.msra.mxu1 %v2751_v40 }
 0x4f0   :  { %1961 = vmatprep.subr.bf16.mxu1 %v2756_v41 }
 0x4f3   :  { %1962 = vmatpush1.bf16.msra.mxu1 %v2754_v42 }
 0x4f4   :  { %1963 = vmatprep.subr.bf16.mxu1 %v2759_v44 }
 0x4f7   :  { %1964 = vmatpush1.bf16.msra.mxu1 %v2757_v45 }
 0x4f8   :  { %1965 = vmatprep.subr.bf16.mxu1 %v2762_v46 }
 0x4fb   :  { %1966 = vmatpush1.bf16.msra.mxu1 %v2760_v49 }
 0x4fc   :  { %1967 = vmatprep.subr.bf16.mxu1 %v2765_v50 }
 0x4ff   :  { %1968 = vmatpush1.bf16.msra.mxu1 %v2763_v51 }
 0x500   :  { %2490 = vmatprep.subr.bf16.mxu1 %v2766_v54 }
 0x502   :  { %1970 = vmatmul.mubr.bf16.vlgmr.msra.gmra.mrb[44].mxu1 %v1497_v53 }
 0x503   :  { %2491 = vmatpush3.bf16.msra.mxu1 %v2767_v43 }
 0x504   :  { %2492 = vmatprep.subr.bf16.mxu1 %v2768_v56 }
 0x507   :  { %2493 = vmatpush3.bf16.msra.mxu1 %v2769_v58 }
 0x508   :  { %2494 = vmatprep.subr.bf16.mxu1 %v2770_v1 }
 0x50b   :  { %2495 = vmatpush3.bf16.msra.mxu1 %v2771_v2 }
 0x50c   :  { %2496 = vmatprep.subr.bf16.mxu1 %v2772_v3 }
 0x50f   :  { %2497 = vmatpush3.bf16.msra.mxu1 %v2773_v4 }
 0x510   :  { %2498 = vmatprep.subr.bf16.mxu1 %v2774_v5 }
 0x513   :  { %2499 = vmatpush3.bf16.msra.mxu1 %v2775_v6 }
 0x514   :  { %2500 = vmatprep.subr.bf16.mxu1 %v2776_v7 }
 0x517   :  { %2501 = vmatpush3.bf16.msra.mxu1 %v2777_v8 }
 0x518   :  { %2502 = vmatprep.subr.bf16.mxu1 %v2778_v9 }
 0x51b   :  { %2503 = vmatpush3.bf16.msra.mxu1 %v2779_v10 }
 0x51c   :  { %2504 = vmatprep.subr.bf16.mxu1 %v2780_v11 }
 0x51f   :  { %2505 = vmatpush3.bf16.msra.mxu1 %v2781_v12 }
 0x595   :  { %v1770_v63 = vpop.f32.mrb[40].mxu1 }
 0x596   :  { %v1772_v16 = vpop.f32.mrb[41].mxu1 }
 0x597   :  { %v1774_v17 = vpop.f32.mrb[42].mxu1 }
 0x598   :  { %v1775_v18 = vpop.f32.mrb[43].mxu1 }
 0x5d5   :  { %v1971_v21 = vpop.f32.mrb[44].mxu1 }
 0x5d6   :  { %v1972_v23 = vadd.f32 %v1971_v21, %v1770_v63  ;;  %v1973_v24 = vpop.f32.mrb[45].mxu1 }
 0x5d7   :  { %v1974_v25 = vadd.f32 %v1973_v24, %v1772_v16  ;;  %v1975_v26 = vpop.f32.mrb[46].mxu1 }
 0x5d8   :  { %v1990_v27 = vadd.f32 %v1983_v20, %v1972_v23  ;;  %v1976_v28 = vpop.f32.mrb[47].mxu1 }
 0x5d9   :  { %v1991_v0 = vadd.f32 %v1987_v22, %v1974_v25 }
 0x5da   :  { %v1992_v29 = vmax.f32 %v1990_v27, 0.0 }
 0x5db   :  { %v1993_v30 = vmax.f32 %v1991_v0, 0.0 }
 0x5dc   :  { %v1994_v59 = vpack.c.bf16 %v1992_v29, %v1992_v29 }
 0x5dd   :  { %v1995_v31 = vpack.c.bf16 %v1993_v30, %v1993_v30 }
 0x5df   :  { %2163 = vmatprep.mubr.bf16.mxu1 %v1995_v31 }
 0x5e0   :  { %2164 = vmatmul.mubr.bf16.vlgmr.msra.gmra.mrb[48].mxu1 %v1994_v59 }
 0x6b3   :  { %v2506_v57 = vpop.f32.mrb[48].mxu1 }
 0x6b4   :  { %v2507_v55 = vpop.f32.mrb[49].mxu1 }
 0x6b5   :  { %v2508_v62 = vadd.f32 %v2507_v55, %v2506_v57  ;;  %v2509_v33 = vpop.f32.mrb[50].mxu1 }
 0x6b6   :  { %v2510_v34 = vpop.f32.mrb[51].mxu1 }
 0x6b7   :  { %v2166_v36 = vadd.f32 %v2508_v62, %v2427_v32 }
 0x6b9   :  { %v2171_v37 = vmax.f32 %v2166_v36, 0.0 }
 0x6bb   :  { %v2172_v38 = vpack.c.bf16 %v2171_v37, %v2171_v37 }
 0x6bd   :  { %2612 = vmatmul.mubr.bf16.vlgmr.msra.gmra.mrb[88].mxu0 %v2172_v38 }
 0x790   :  { %v2278_v40 = vpop.f32.mrb[88].mxu0 }
 0x791   :  { %v2279_v41 = vadd.f32 %v2444_v39, %v2278_v40  ;;  %v2613_v42 = vpop.f32.mrb[89].mxu0 }
 0x792   :  { %v2281_v44 = vpop.f32.mrb[90].mxu0 }
 0x793   :  { %2284 = vst [vmem:[#allocation27] sm:$0x3] %v2279_v41  ;;  %v2614_v35 = vpop.f32.mrb[91].mxu0 }
 0x794   :  { %3109 = shalt.err (!%p3106_p4)
}
 0x795   :  { %s3110_s20 = scalar_lea.hbm %s3704_s14, 32 }
 0x796   :  { %p3111_p5 = scmp.ne.s32.totalorder %s3704_s14, %s3110_s20  ;;  %p3114_p6 = scmp.lt.u32.totalorder %s3110_s20, %s3704_s14 }
 0x798   :  { %p3116_p7 = pnand %p3114_p6, %p3111_p5 }
 0x79a   :  { %3119 = shalt.err (!%p3116_p7)
}
 0x79b   :  { %2294 = dma.vmem_to_hbm [thread:$0]  %s2292_s30, 32, %s3704_s14, [#allocation6]  }
 0x79c   :  { %3136 = dma.done.wait [#allocation6], 32  }
 0x79d   :  { %3137 = vsyncadd [#allocation6], 4294967264 }
 0x79e   :  { %2298 = vsyncpa [#allocation5], 1 }
 0x79f   :  { %2299 = vsyncpa [#allocation8], 1 }
 0x7a0   :  { %2300 = vsyncpa [#allocation11], 1 }
 0x7a1   :  { %2301 = vsyncpa [#allocation14], 1 }
 0x7a2   :  { %2302 = vsyncpa [#allocation17], 1 }
 0x7a3   :  { %2303 = vsyncpa [#allocation20], 1 }
 0x7a4   :  { %2304 = vsyncpa [#allocation23], 1 }
 0x7a5   :  { %2305 = vsyncpa [#allocation26], 1 }
 0x7a6   :  { %2306 = vsyncpa [#allocation6], 1 }

</bundles_post_ra>
